<compile_context>
chip_gen: v5e
topology: v5e:2x2
jax: 0.10.0
libtpu: 0.0.40
codegen_flags: <defaults>
</compile_context>

<pallas_src>
import jax
import jax.numpy as jnp
from jax import lax
from jax.experimental import pallas as pl
from jax.experimental.pallas import tpu as pltpu

_LANE = 128
_SUBLANE = 8


def _round_up(x, m):
    return ((x + m - 1) // m) * m


def _pad2d(a, rows, cols):
    r, c = a.shape
    if r == rows and c == cols:
        return a
    return jnp.pad(a, ((0, rows - r), (0, cols - c)))


def _make_mlp_kernel(num_layers, in_features, use_vpu_first_layer, precision):
    """Kernel computing the full (padded) MLP for one batch tile; params in VMEM."""

    def kernel(x_ref, *refs):
        # refs = (w1, b1, w2, b2, ..., wL, bL, out_ref)
        out_ref = refs[-1]
        params = refs[:-1]

        h = x_ref[...]
        for i in range(num_layers):
            w = params[2 * i][...]          # (in_pad, out_pad)
            b = params[2 * i + 1][...]      # (1, out_pad)
            if i == 0 and use_vpu_first_layer:
                # K is tiny (e.g. 2): skip the MXU, use VPU broadcast FMAs.
                acc = b + h[:, 0:1] * w[0:1, :]
                for k in range(1, in_features):
                    acc = acc + h[:, k:k + 1] * w[k:k + 1, :]
                h = acc
            else:
                h = jnp.dot(h, w,
                            preferred_element_type=jnp.float32,
                            precision=precision) + b
            if i < num_layers - 1:          # Tanh after every layer but the last
                h = jnp.tanh(h)
        # Narrow-output path: store only the real output columns (out block's
        # last dim equals the full output width when output_size is small).
        out_ref[...] = h[:, :out_ref.shape[-1]].astype(out_ref.dtype)

    return kernel


def dnn2_forward(x, weights, biases, *, max_block_batch=None,
                 narrow_out_max=64, vpu_first_layer_max_k=8):
    """DNN2 forward pass with a Pallas TPU kernel.

    Args:
      x:       (batch, input_size) float32
      weights: list of (in, out) float32 matrices, length hidden_num + 1
      biases:  list of (out,) float32 vectors, same length
    Returns:
      (batch, output_size) float32
    """
    batch, in_features = x.shape
    num_layers = len(weights)
    output_size = weights[-1].shape[1]

    use_vpu_first = in_features <= vpu_first_layer_max_k

    # Padded layer widths: every feature dim becomes a multiple of 128 (lane-dense).
    # The first (contraction-only) dim stays unpadded when the VPU path is used.
    dims = [in_features] + [w.shape[1] for w in weights]
    pdims = list(dims)
    pdims[0] = in_features if use_vpu_first else _round_up(in_features, _LANE)
    for i in range(1, len(dims)):
        pdims[i] = _round_up(dims[i], _LANE)

    # Zero-pad parameters (exact: padded lanes stay 0 through every layer).
    param_args = []
    for i, (w, b) in enumerate(zip(weights, biases)):
        wp = _pad2d(w.astype(jnp.float32), pdims[i], pdims[i + 1])
        bp = _pad2d(b.reshape(1, -1).astype(jnp.float32), 1, pdims[i + 1])
        param_args += [wp, bp]

    # Output layout: tiny output widths (output_size=1 here) use a narrow,
    # full-dim last axis -> up to 128x less HBM writeback; wide outputs keep
    # the lane-dense padded layout so stores are unmasked vst.
    narrow_out = output_size <= narrow_out_max
    out_cols = output_size if narrow_out else pdims[-1]

    # Generation-aware batch-tile cap: ~1/8 of this chip's VMEM, which keeps
    # far under the tightest scoped default (32 MiB on v7x; 64 MiB physical).
    if max_block_batch is None:
        try:
            vmem_bytes = pltpu.get_tpu_info().vmem_capacity_bytes
        except Exception:
            vmem_bytes = 64 << 20
        budget = max(4 << 20, vmem_bytes // 8)
        # ~live f32 activations per row plus double-buffered x/out tiles.
        bytes_per_row = 4 * max(pdims) * 6
        max_block_batch = max(_SUBLANE, budget // bytes_per_row)

    # >=2 grid steps so both v7x TensorCores get work (near-free elsewhere),
    # capped by the VMEM-derived tile size; batch padded to a whole tile.
    bb = _round_up(pl.cdiv(batch, 2), _SUBLANE)
    bb = min(bb, _round_up(max_block_batch, _SUBLANE))
    bb = max(bb, _SUBLANE)
    batch_padded = _round_up(batch, bb)
    grid = (batch_padded // bb,)

    x_p = _pad2d(x.astype(jnp.float32), batch_padded, pdims[0])

    x_spec = pl.BlockSpec((bb, pdims[0]), lambda i: (i, 0))
    out_spec = pl.BlockSpec((bb, out_cols), lambda i: (i, 0))
    out_shape = jax.ShapeDtypeStruct((batch_padded, out_cols), jnp.float32)

    # Config ladder: prefer HIGH precision (3-pass f32 on MXU) and
    # single-buffered resident params; fall back gracefully if a combination
    # is rejected by this Pallas/Mosaic version so the script always runs.
    configs = [
        (lax.Precision.HIGH, pl.Buffered(1)),
        (lax.Precision.HIGH, None),
        (lax.Precision.HIGHEST, None),
    ]
    out_padded, last_err = None, None
    for precision, pmode in configs:
        kernel = _make_mlp_kernel(num_layers, in_features, use_vpu_first,
                                  precision)
        spec_kwargs = {} if pmode is None else {"pipeline_mode": pmode}
        # Weights / biases: whole (padded) arrays resident in VMEM; grid-
        # invariant index_map so the pipeline never re-DMAs them across tiles.
        param_specs = [pl.BlockSpec(p.shape, lambda i: (0, 0), **spec_kwargs)
                       for p in param_args]
        call = pl.pallas_call(
            kernel,
            out_shape=out_shape,
            grid_spec=pltpu.PrefetchScalarGridSpec(
                num_scalar_prefetch=0,
                grid=grid,
                in_specs=[x_spec] + param_specs,
                out_specs=out_spec,
            ),
            compiler_params=pltpu.CompilerParams(
                dimension_semantics=("parallel",),  # batch tiles across TCs on v7x
            ),
        )
        try:
            out_padded = call(x_p, *param_args)
            break
        except Exception as e:  # lowering/compile failure for this config
            last_err = e
    if out_padded is None:
        raise last_err

    return out_padded[:batch, :output_size]


def init_dnn2_params(key, input_size, hidden_size, output_size, hidden_num):
    """Deterministic synthetic init matching DNN2's layer shapes."""
    sizes = [input_size] + [hidden_size] * hidden_num + [output_size]
    weights, biases = [], []
    for li in range(len(sizes) - 1):
        key, kw, kb = jax.random.split(key, 3)
        fan_in = sizes[li]
        bound = 1.0 / jnp.sqrt(fan_in)
        w = jax.random.uniform(kw, (sizes[li], sizes[li + 1]),
                               minval=-bound, maxval=bound, dtype=jnp.float32)
        b = jax.random.uniform(kb, (sizes[li + 1],),
                               minval=-bound, maxval=bound, dtype=jnp.float32)
        weights.append(w)
        biases.append(b)
    return weights, biases


def dnn2_reference(x, weights, biases):
    h = x
    for i, (w, b) in enumerate(zip(weights, biases)):
        h = jnp.dot(h, w, precision=lax.Precision.HIGHEST) + b
        if i < len(weights) - 1:
            h = jnp.tanh(h)
    return h


if __name__ == "__main__":
    # Small shapes consistent with the module: a PINN-style MLP (2 -> 32^3 -> 1).
    input_size, hidden_size, output_size, hidden_num = 2, 32, 1, 3
    batch = 128

    key = jax.random.PRNGKey(0)
    key, kx = jax.random.split(key)
    x = jax.random.normal(kx, (batch, input_size), dtype=jnp.float32)

    weights, biases = init_dnn2_params(key, input_size, hidden_size,
                                       output_size, hidden_num)

    out = dnn2_forward(x, weights, biases)
    out = jax.block_until_ready(out)

    ref = dnn2_reference(x, weights, biases)
    assert out.shape == (batch, output_size)
    # HIGH-precision (bf16_3x) MXU vs HIGHEST reference: error << 1e-5 here;
    # tolerance kept at PINN-grade with 2x headroom.
    assert jnp.allclose(out, ref, atol=2e-5, rtol=2e-5)

    print("KERNEL_OK")
</pallas_src>

<mosaic_0001>
module attributes {stable_mosaic.version = 11 : i64} {
  func.func @kernel(%arg0: i32, %arg1: memref<64x2xf32, #tpu.memory_space<vmem>>, %arg2: memref<2x128xf32, #tpu.memory_space<vmem>>, %arg3: memref<1x128xf32, #tpu.memory_space<vmem>>, %arg4: memref<128x128xf32, #tpu.memory_space<vmem>>, %arg5: memref<1x128xf32, #tpu.memory_space<vmem>>, %arg6: memref<128x128xf32, #tpu.memory_space<vmem>>, %arg7: memref<1x128xf32, #tpu.memory_space<vmem>>, %arg8: memref<128x128xf32, #tpu.memory_space<vmem>>, %arg9: memref<1x128xf32, #tpu.memory_space<vmem>>, %arg10: memref<64x1xf32, #tpu.memory_space<vmem>>) attributes {dimension_semantics = [#tpu.dimension_semantics<parallel>], iteration_bounds = array<i64: 2>, scalar_prefetch = 0 : i64, scratch_operands = 0 : i64, tpu.core_type = #tpu.core_type<tc>, window_params = [{transform_indices = @transform_0, window_bounds = array<i64: 64, 2>}, {pipeline_mode = #tpu.pipeline_mode<synchronous>, transform_indices = @transform_1, window_bounds = array<i64: 2, 128>}, {pipeline_mode = #tpu.pipeline_mode<synchronous>, transform_indices = @transform_2, window_bounds = array<i64: 1, 128>}, {pipeline_mode = #tpu.pipeline_mode<synchronous>, transform_indices = @transform_3, window_bounds = array<i64: 128, 128>}, {pipeline_mode = #tpu.pipeline_mode<synchronous>, transform_indices = @transform_4, window_bounds = array<i64: 1, 128>}, {pipeline_mode = #tpu.pipeline_mode<synchronous>, transform_indices = @transform_5, window_bounds = array<i64: 128, 128>}, {pipeline_mode = #tpu.pipeline_mode<synchronous>, transform_indices = @transform_6, window_bounds = array<i64: 1, 128>}, {pipeline_mode = #tpu.pipeline_mode<synchronous>, transform_indices = @transform_7, window_bounds = array<i64: 128, 128>}, {pipeline_mode = #tpu.pipeline_mode<synchronous>, transform_indices = @transform_8, window_bounds = array<i64: 1, 128>}, {transform_indices = @transform_9, window_bounds = array<i64: 64, 1>}]} {
    %c0 = arith.constant 0 : index
    %c0_0 = arith.constant 0 : index
    %0 = vector.load %arg1[%c0, %c0_0] : memref<64x2xf32, #tpu.memory_space<vmem>>, vector<64x2xf32>
    %c0_1 = arith.constant 0 : index
    %c0_2 = arith.constant 0 : index
    %1 = vector.load %arg2[%c0_1, %c0_2] : memref<2x128xf32, #tpu.memory_space<vmem>>, vector<2x128xf32>
    %c0_3 = arith.constant 0 : index
    %c0_4 = arith.constant 0 : index
    %2 = vector.load %arg3[%c0_3, %c0_4] : memref<1x128xf32, #tpu.memory_space<vmem>>, vector<1x128xf32>
    %3 = vector.extract_strided_slice %0 {offsets = [0, 0], sizes = [64, 1], strides = [1, 1]} : vector<64x2xf32> to vector<64x1xf32>
    %4 = vector.extract_strided_slice %1 {offsets = [0, 0], sizes = [1, 128], strides = [1, 1]} : vector<2x128xf32> to vector<1x128xf32>
    %5 = vector.broadcast %3 : vector<64x1xf32> to vector<64x128xf32>
    %6 = vector.broadcast %4 : vector<1x128xf32> to vector<64x128xf32>
    %7 = arith.mulf %5, %6 : vector<64x128xf32>
    %8 = vector.broadcast %2 : vector<1x128xf32> to vector<64x128xf32>
    %9 = arith.addf %8, %7 : vector<64x128xf32>
    %10 = vector.extract_strided_slice %0 {offsets = [0, 1], sizes = [64, 1], strides = [1, 1]} : vector<64x2xf32> to vector<64x1xf32>
    %11 = vector.extract_strided_slice %1 {offsets = [1, 0], sizes = [1, 128], strides = [1, 1]} : vector<2x128xf32> to vector<1x128xf32>
    %12 = vector.broadcast %10 : vector<64x1xf32> to vector<64x128xf32>
    %13 = vector.broadcast %11 : vector<1x128xf32> to vector<64x128xf32>
    %14 = arith.mulf %12, %13 : vector<64x128xf32>
    %15 = arith.addf %9, %14 : vector<64x128xf32>
    %16 = math.tanh %15 : vector<64x128xf32>
    %c0_5 = arith.constant 0 : index
    %c0_6 = arith.constant 0 : index
    %17 = vector.load %arg4[%c0_5, %c0_6] : memref<128x128xf32, #tpu.memory_space<vmem>>, vector<128x128xf32>
    %c0_7 = arith.constant 0 : index
    %c0_8 = arith.constant 0 : index
    %18 = vector.load %arg5[%c0_7, %c0_8] : memref<1x128xf32, #tpu.memory_space<vmem>>, vector<1x128xf32>
    %cst = arith.constant dense<0.000000e+00> : vector<64x128xf32>
    %19 = tpu.matmul %16, %17, %cst {dimension_numbers = #tpu.dot_dimension_numbers<[1], [0], [0], [1], [0, 0, 1, 1], [], []>, precision = #tpu.contract_precision<fp32>} : vector<64x128xf32>, vector<128x128xf32>, vector<64x128xf32> -> vector<64x128xf32>
    %20 = vector.broadcast %18 : vector<1x128xf32> to vector<64x128xf32>
    %21 = arith.addf %19, %20 : vector<64x128xf32>
    %22 = math.tanh %21 : vector<64x128xf32>
    %c0_9 = arith.constant 0 : index
    %c0_10 = arith.constant 0 : index
    %23 = vector.load %arg6[%c0_9, %c0_10] : memref<128x128xf32, #tpu.memory_space<vmem>>, vector<128x128xf32>
    %c0_11 = arith.constant 0 : index
    %c0_12 = arith.constant 0 : index
    %24 = vector.load %arg7[%c0_11, %c0_12] : memref<1x128xf32, #tpu.memory_space<vmem>>, vector<1x128xf32>
    %cst_13 = arith.constant dense<0.000000e+00> : vector<64x128xf32>
    %25 = tpu.matmul %22, %23, %cst_13 {dimension_numbers = #tpu.dot_dimension_numbers<[1], [0], [0], [1], [0, 0, 1, 1], [], []>, precision = #tpu.contract_precision<fp32>} : vector<64x128xf32>, vector<128x128xf32>, vector<64x128xf32> -> vector<64x128xf32>
    %26 = vector.broadcast %24 : vector<1x128xf32> to vector<64x128xf32>
    %27 = arith.addf %25, %26 : vector<64x128xf32>
    %28 = math.tanh %27 : vector<64x128xf32>
    %c0_14 = arith.constant 0 : index
    %c0_15 = arith.constant 0 : index
    %29 = vector.load %arg8[%c0_14, %c0_15] : memref<128x128xf32, #tpu.memory_space<vmem>>, vector<128x128xf32>
    %c0_16 = arith.constant 0 : index
    %c0_17 = arith.constant 0 : index
    %30 = vector.load %arg9[%c0_16, %c0_17] : memref<1x128xf32, #tpu.memory_space<vmem>>, vector<1x128xf32>
    %cst_18 = arith.constant dense<0.000000e+00> : vector<64x128xf32>
    %31 = tpu.matmul %28, %29, %cst_18 {dimension_numbers = #tpu.dot_dimension_numbers<[1], [0], [0], [1], [0, 0, 1, 1], [], []>, precision = #tpu.contract_precision<fp32>} : vector<64x128xf32>, vector<128x128xf32>, vector<64x128xf32> -> vector<64x128xf32>
    %32 = vector.broadcast %30 : vector<1x128xf32> to vector<64x128xf32>
    %33 = arith.addf %31, %32 : vector<64x128xf32>
    %34 = vector.extract_strided_slice %33 {offsets = [0, 0], sizes = [64, 1], strides = [1, 1]} : vector<64x128xf32> to vector<64x1xf32>
    %c0_19 = arith.constant 0 : index
    %c0_20 = arith.constant 0 : index
    %35 = vector.load %arg10[%c0_19, %c0_20] : memref<64x1xf32, #tpu.memory_space<vmem>>, vector<64x1xf32>
    tpu.vector_store %arg10[%c0_19, %c0_20], %34 {strides = array<i32>} : memref<64x1xf32, #tpu.memory_space<vmem>>, vector<64x1xf32>,
    return
  }
  func.func @transform_0(%arg0: i32) -> (i32, i32) {
    %c0_i32 = arith.constant 0 : i32
    %c0_i32_0 = arith.constant 0 : i32
    return %arg0, %c0_i32 : i32, i32
  }
  func.func @transform_1(%arg0: i32) -> (i32, i32) {
    %c0_i32 = arith.constant 0 : i32
    %c0_i32_0 = arith.constant 0 : i32
    %c0_i32_1 = arith.constant 0 : i32
    return %c0_i32, %c0_i32_0 : i32, i32
  }
  func.func @transform_2(%arg0: i32) -> (i32, i32) {
    %c0_i32 = arith.constant 0 : i32
    %c0_i32_0 = arith.constant 0 : i32
    %c0_i32_1 = arith.constant 0 : i32
    return %c0_i32, %c0_i32_0 : i32, i32
  }
  func.func @transform_3(%arg0: i32) -> (i32, i32) {
    %c0_i32 = arith.constant 0 : i32
    %c0_i32_0 = arith.constant 0 : i32
    %c0_i32_1 = arith.constant 0 : i32
    return %c0_i32, %c0_i32_0 : i32, i32
  }
  func.func @transform_4(%arg0: i32) -> (i32, i32) {
    %c0_i32 = arith.constant 0 : i32
    %c0_i32_0 = arith.constant 0 : i32
    %c0_i32_1 = arith.constant 0 : i32
    return %c0_i32, %c0_i32_0 : i32, i32
  }
  func.func @transform_5(%arg0: i32) -> (i32, i32) {
    %c0_i32 = arith.constant 0 : i32
    %c0_i32_0 = arith.constant 0 : i32
    %c0_i32_1 = arith.constant 0 : i32
    return %c0_i32, %c0_i32_0 : i32, i32
  }
  func.func @transform_6(%arg0: i32) -> (i32, i32) {
    %c0_i32 = arith.constant 0 : i32
    %c0_i32_0 = arith.constant 0 : i32
    %c0_i32_1 = arith.constant 0 : i32
    return %c0_i32, %c0_i32_0 : i32, i32
  }
  func.func @transform_7(%arg0: i32) -> (i32, i32) {
    %c0_i32 = arith.constant 0 : i32
    %c0_i32_0 = arith.constant 0 : i32
    %c0_i32_1 = arith.constant 0 : i32
    return %c0_i32, %c0_i32_0 : i32, i32
  }
  func.func @transform_8(%arg0: i32) -> (i32, i32) {
    %c0_i32 = arith.constant 0 : i32
    %c0_i32_0 = arith.constant 0 : i32
    %c0_i32_1 = arith.constant 0 : i32
    return %c0_i32, %c0_i32_0 : i32, i32
  }
  func.func @transform_9(%arg0: i32) -> (i32, i32) {
    %c0_i32 = arith.constant 0 : i32
    %c0_i32_0 = arith.constant 0 : i32
    return %arg0, %c0_i32 : i32, i32
  }
}

</mosaic_0001>

<bundles_post_ra>
// kernel: tpu_custom_call.1
= control target key start
LH: loop header
LB: loop body
LE: loop exit
PB: predicated region body
PF: predicated region fallthrough
CT: control target
= control target key end

     0   :  { %14 = vsyncpa [#allocation3], 0  ;;  %s3763_s0 = inlined_call_operand.vmem [shape: f32[128,2], index: 0, kind: input, shape index: {}]   ;;  %s3764_s1 = inlined_call_operand.vmem [shape: f32[2,128], index: 1, kind: input, shape index: {}]   ;;  %s3765_s2 = inlined_call_operand.vmem [shape: f32[1,128], index: 2, kind: input, shape index: {}]   ;;  %s3766_s3 = inlined_call_operand.vmem [shape: f32[128,128], index: 3, kind: input, shape index: {}]   ;;  %s3767_s4 = inlined_call_operand.vmem [shape: f32[1,128], index: 4, kind: input, shape index: {}]   ;;  %s3768_s5 = inlined_call_operand.hbm [shape: f32[128,128], index: 5, kind: input, shape index: {}]   ;;  %s3769_s6 = inlined_call_operand.vmem [shape: f32[1,128], index: 6, kind: input, shape index: {}]   ;;  %s3770_s7 = inlined_call_operand.hbm [shape: f32[128,128], index: 7, kind: input, shape index: {}]   ;;  %s3771_s8 = inlined_call_operand.vmem [shape: f32[1,128], index: 8, kind: input, shape index: {}]   ;;  %s3772_s9 = inlined_call_operand.vmem [shape: f32[128,1], index: 9, kind: output, shape index: {}]  }
   0x1   :  { %15 = vsyncpa [#allocation5], 0  ;;  %s2608_s30 = smov 0  }
   0x2 LB: > { %s269_s12 = sshll.u32 %s3768_s5, 4  ;;  %s2334_s13 = sadd.s32 4294967295, %s2550_s30   ;;  %s2550_s30 = sphi %s2608_s30, %s21_s30   ;;  %s270_s12 = int_to_ptr.hbm [resolvable:$true] %s269_s12 }
   0x3   : > { %p2336_p0 = scmp.ge.s32.totalorder %s2550_s30, 1  ;;  %p246_p1 = scmp.lt.s32.totalorder %s2550_s30, 3 }
   0x4   : > { %p2619_p2 = scmp.eq.s32.totalorder %s2334_s13, 0  ;;  %s2552_s16 = smov [#allocation2]  }
   0x5   : > { %p2623_p3 = pnand %p2336_p0, %p246_p1  ;;  %s271_s17 = sshll.u32 %s2552_s16, 4  ;;  %s272_s17 = int_to_ptr.vmem [resolvable:$true] %s271_s17 }
   0x6   : > { %s286_s20 = sshll.u32 %s3770_s7, 4  ;;  %s2553_s21 = smov [#allocation4]   ;;  %s287_s20 = int_to_ptr.hbm [resolvable:$true] %s286_s20 }
   0x7   : > { %p2389_p4 = pneg %p2623_p3  ;;  %s288_s22 = sshll.u32 %s2553_s21, 4  ;;  %s289_s22 = int_to_ptr.vmem [resolvable:$true] %s288_s22 }
   0x8   : > { %s2554_s23 = smov 128   ;;  %s2555_s24 = smov 8  }
   0x9   : > { %p2390_p5 = pnand %p2619_p2, %p2389_p4  ;;  %316 = sbr.rel (%p2623_p3) target bundleno = 827 (0x33b), region = 56 }
   0xb   : > { %2392 = dma.hbm_to_vmem [thread:$0]  (!%p2390_p5), %s270_s12, 2048, %s272_s17, [#allocation3], %s2554_s23, %s2554_s23, %s2555_s24  }
   0xc   : > { %2395 = dma.hbm_to_vmem [thread:$0]  (!%p2390_p5), %s287_s20, 2048, %s289_s22, [#allocation5], %s2554_s23, %s2554_s23, %s2555_s24  }
   0xe   : > { %2541 = dma.done.wait (%p2619_p2), [#allocation3], 2048  }
   0xf   : > { %2543 = vsyncadd (%p2619_p2), [#allocation3], 4294965248 }
  0x10   : > { %2545 = dma.done.wait (%p2619_p2), [#allocation5], 2048  }
  0x11   : > { %2547 = vsyncadd (%p2619_p2), [#allocation5], 4294965248  ;;  %s2343_s25 = sshll.u32 %s2334_s13, 3  ;;  %v2556_v0 = vmov 0   ;;  %v2557_v1 = vmov 1   ;;  %v512_v5 = vld [vmem:[%s3766_s3 + $0x78] sm:$0xff] }
  0x12   : > { %2416 = vset.pattern.permute.xlu1 %v2556_v0  ;;  %2414 = vset.pattern.permute.xlu0 %v2556_v0  ;;  %p359_p6 = scmp.lt.s32.totalorder %s2343_s25, 15  ;;  %v511_v6 = vld [vmem:[%s3766_s3 + $0x70] sm:$0xff]  ;;  %v2663_v7 = vand.u32 4294901760, %v512_v5  ;;  %v510_v22 = vld [vmem:[%s3766_s3 + $0x68] sm:$0xff]  ;;  %v509_v23 = vld [vmem:[%s3766_s3 + $0x60] sm:$0xff]  ;;  %vm2247_vm0 = vcmask 7168  }
  0x13   : > { %2417 = vset.pattern.permute.xlu2 %v2557_v1  ;;  %v2665_v8 = vand.u32 4294901760, %v511_v6  ;;  %v508_v24 = vld [vmem:[%s3766_s3 + $0x58] sm:$0xff]  ;;  %v2699_v25 = vand.u32 4294901760, %v510_v22  ;;  %v2701_v26 = vand.u32 4294901760, %v509_v23  ;;  %v507_v40 = vld [vmem:[%s3766_s3 + $0x50] sm:$0xff]  ;;  %v506_v42 = vld [vmem:[%s3766_s3 + $0x48] sm:$0xff] }
  0x14   : > { %s3788_s25 = smov (!%p359_p6, %s2343_s25), 15  ;;  %v2669_v10 = vsub.f32 %v512_v5, %v2663_v7  ;;  %2349 = vmatpush.msra.mxu2 %v2663_v7  ;;  %518 = vmatpush.msra.mxu0 %v2663_v7  ;;  %v2703_v27 = vand.u32 4294901760, %v508_v24  ;;  %v2735_v41 = vand.u32 4294901760, %v507_v40  ;;  %v2743_v44 = vand.u32 4294901760, %v506_v42  ;;  %v505_v45 = vld [vmem:[%s3766_s3 + $0x40] sm:$0xff]  ;;  %v504_v49 = vld [vmem:[%s3766_s3 + $0x38] sm:$0xff] }
  0x15   : > { %s2344_s26 = sshll.u32 %s3788_s25, 3  ;;  %v2672_v11 = vsub.f32 %v511_v6, %v2665_v8  ;;  %v2706_v28 = vsub.f32 %v510_v22, %v2699_v25  ;;  %v2709_v29 = vsub.f32 %v509_v23, %v2701_v26  ;;  %v2754_v48 = vand.u32 4294901760, %v505_v45  ;;  %v503_v54 = vld [vmem:[%s3766_s3 + $0x30] sm:$0xff]  ;;  %v502_v60 = vld [vmem:[%s3766_s3 + $0x28] sm:$0xff] }
  0x16   : > { %s2652_s29 = scalar_lea.vmem %s3763_s0, %s2344_s26  ;;  %v616_v12 = vand.u32 4294901760, %v2669_v10  ;;  %2350 = vmatpush.msra.mxu2 %v2665_v8  ;;  %520 = vmatpush.msra.mxu0 %v2665_v8  ;;  %v2712_v30 = vsub.f32 %v508_v24, %v2703_v27  ;;  %v2741_v43 = vsub.f32 %v507_v40, %v2735_v41  ;;  %v2752_v47 = vsub.f32 %v506_v42, %v2743_v44  ;;  %v497_v42 = vld [vmem:[%s3766_s3] sm:$0xff]  ;;  %s3733_s18 = scalar_lea.vmem %s3772_s9, %s2344_s26 }
  0x17   : > { %v375_v2 = vld [vmem:[%s2652_s29 + $0x28] sm:$0xff]  ;;  %v374_v3 = vld [vmem:[%s2652_s29 + $0x20] sm:$0xff]  ;;  %v376_v9 = vld [vmem:[%s2652_s29 + $0x30] sm:$0xff]  ;;  %v622_v13 = vand.u32 4294901760, %v2672_v11  ;;  %v628_v31 = vand.u32 4294901760, %v2706_v28  ;;  %v634_v32 = vand.u32 4294901760, %v2709_v29  ;;  %v2766_v52 = vsub.f32 %v505_v45, %v2754_v48 }
  0x18   : > { %407 = vperm.xlu1 %2416, %v375_v2   ;;  %402 = vperm.xlu0 %2414, %v374_v3   ;;  %v370_v4 = vld [vmem:[%s2652_s29] sm:$0xff]  ;;  %v371_v14 = vld [vmem:[%s2652_s29 + $0x8] sm:$0xff]  ;;  %v617_v15 = vsub.f32 %v2669_v10, %v616_v12  ;;  %v372_v19 = vld [vmem:[%s2652_s29 + $0x10] sm:$0xff]  ;;  %v640_v33 = vand.u32 4294901760, %v2712_v30  ;;  %v646_v46 = vand.u32 4294901760, %v2741_v43  ;;  %v652_v51 = vand.u32 4294901760, %v2752_v47 }
  0x19   : > { %461 = vperm.xlu2 %2417, %v375_v2   ;;  %v623_v16 = vsub.f32 %v2672_v11, %v622_v13  ;;  %v377_v20 = vld [vmem:[%s2652_s29 + $0x38] sm:$0xff]  ;;  %2351 = vmatpush.msra.mxu2 %v2699_v25  ;;  %v629_v34 = vsub.f32 %v2706_v28, %v628_v31  ;;  %v635_v35 = vsub.f32 %v2709_v29, %v634_v32  ;;  %v2768_v53 = vand.u32 4294901760, %v504_v49  ;;  %v501_v2 = vld [vmem:[%s3766_s3 + $0x20] sm:$0xff] }
  0x1a   : > { %v618_v17 = vand.u32 4294901760, %v617_v15  ;;  %v373_v21 = vld [vmem:[%s2652_s29 + $0x18] sm:$0xff]  ;;  %522 = vmatpush.msra.mxu0 %v2699_v25  ;;  %v641_v36 = vsub.f32 %v2712_v30, %v640_v33  ;;  %v647_v50 = vsub.f32 %v2741_v43, %v646_v46  ;;  %v653_v56 = vsub.f32 %v2752_v47, %v652_v51 }
  0x1b   : > { %v624_v18 = vand.u32 4294901760, %v623_v16  ;;  %2352 = vmatpush.msra.mxu2 %v2701_v26  ;;  %v630_v37 = vand.u32 4294901760, %v629_v34  ;;  %v636_v38 = vand.u32 4294901760, %v635_v35  ;;  %v658_v57 = vand.u32 4294901760, %v2766_v52  ;;  %v498_v35 = vld [vmem:[%s3766_s3 + $0x8] sm:$0xff] }
  0x1c   : > { %2365 = vmatpush.msra.mxu3 %v618_v17  ;;  %619 = vmatpush.msra.mxu1 %v618_v17  ;;  %v642_v39 = vand.u32 4294901760, %v641_v36  ;;  %v648_v55 = vand.u32 4294901760, %v647_v50  ;;  %v2780_v58 = vsub.f32 %v504_v49, %v2768_v53  ;;  %v2784_v59 = vand.u32 4294901760, %v503_v54 }
  0x1d   : > { %524 = vmatpush.msra.mxu0 %v2701_v26  ;;  %2353 = vmatpush.msra.mxu2 %v2703_v27  ;;  %v654_v61 = vand.u32 4294901760, %v653_v56  ;;  %v659_v62 = vsub.f32 %v2766_v52, %v658_v57  ;;  %v2809_v6 = vand.u32 4294901760, %v501_v2  ;;  %v2852_v40 = vand.u32 4294901760, %v498_v35 }
  0x1e   : > { %2366 = vmatpush.msra.mxu3 %v624_v18  ;;  %625 = vmatpush.msra.mxu1 %v624_v18  ;;  %v664_v63 = vand.u32 4294901760, %v2780_v58  ;;  %v2860_v50 = vand.u32 4294901760, %v497_v42 }
  0x1f   : > { %526 = vmatpush.msra.mxu0 %v2703_v27  ;;  %2354 = vmatpush.msra.mxu2 %v2735_v41  ;;  %v2819_v17 = vsub.f32 %v501_v2, %v2809_v6 }
  0x20   : > { %2415 = vset.pattern.permute.xlu0 %v2557_v1  ;;  %382 = vperm.xlu1 %2416, %v370_v4  }
  0x21   : > { %457 = vperm.xlu0 %2415, %v374_v3   ;;  %441 = vperm.xlu2 %2417, %v370_v4   ;;  %v660_v3 = vand.u32 4294901760, %v659_v62  ;;  %v665_v4 = vsub.f32 %v2780_v58, %v664_v63  ;;  %v682_v22 = vand.u32 4294901760, %v2819_v17 }
  0x22   : > { %2367 = vmatpush.msra.mxu3 %v630_v37  ;;  %631 = vmatpush.msra.mxu1 %v630_v37 }
  0x23   : > { %528 = vmatpush.msra.mxu0 %v2735_v41  ;;  %2355 = vmatpush.msra.mxu2 %v2743_v44  ;;  %v666_v15 = vand.u32 4294901760, %v665_v4  ;;  %v683_v37 = vsub.f32 %v2819_v17, %v682_v22 }
  0x24   : > { %2368 = vmatpush.msra.mxu3 %v636_v38  ;;  %637 = vmatpush.msra.mxu1 %v636_v38 }
  0x25   : > { %530 = vmatpush.msra.mxu0 %v2743_v44  ;;  %2356 = vmatpush.msra.mxu2 %v2754_v48  ;;  %v684_v45 = vand.u32 4294901760, %v683_v37 }
  0x26   : > { %2369 = vmatpush.msra.mxu3 %v642_v39  ;;  %643 = vmatpush.msra.mxu1 %v642_v39 }
  0x27   : > { %532 = vmatpush.msra.mxu0 %v2754_v48  ;;  %2357 = vmatpush.msra.mxu2 %v2768_v53 }
  0x28   : > { %412 = vperm.xlu1 %2416, %v376_v9   ;;  %2370 = vmatpush.msra.mxu3 %v648_v55 }
  0x29   : > { %465 = vperm.xlu0 %2415, %v376_v9   ;;  %2418 = vset.pattern.permute.xlu2 %v2556_v0 }
  0x2a   : > { %387 = vperm.xlu2 %2418, %v371_v14   ;;  %534 = vmatpush.msra.mxu0 %v2768_v53 }
  0x2b   : > { %649 = vmatpush.msra.mxu1 %v648_v55  ;;  %2358 = vmatpush.msra.mxu2 %v2784_v59  ;;  %v2866_v55 = vsub.f32 %v498_v35, %v2852_v40 }
  0x2c   : > { %536 = vmatpush.msra.mxu0 %v2784_v59  ;;  %2371 = vmatpush.msra.mxu3 %v654_v61 }
  0x2d   : > { %655 = vmatpush.msra.mxu1 %v654_v61  ;;  %v700_v62 = vand.u32 4294901760, %v2866_v55 }
  0x2e   : > { %2372 = vmatpush.msra.mxu3 %v660_v3 }
  0x2f   : > { %661 = vmatpush.msra.mxu1 %v660_v3  ;;  %v701_v4 = vsub.f32 %v2866_v55, %v700_v62 }
  0x30   : > { %2419 = vset.pattern.permute.xlu1 %v2557_v1  ;;  %2373 = vmatpush.msra.mxu3 %v666_v15 }
  0x31   : > { %445 = vperm.xlu1 %2419, %v371_v14   ;;  %2420 = vset.pattern.permute.xlu0 %v2556_v0  ;;  %v500_v14 = vld [vmem:[%s3766_s3 + $0x18] sm:$0xff] }
  0x32   : > { %392 = vperm.xlu0 %2420, %v372_v19   ;;  %417 = vperm.xlu2 %2418, %v377_v20   ;;  %v2821_v18 = vand.u32 4294901760, %v500_v14 }
  0x33   : > { %667 = vmatpush.msra.mxu1 %v666_v15 }
  0x34   : > { %v2836_v23 = vsub.f32 %v500_v14, %v2821_v18 }
  0x36   : > { %v688_v38 = vand.u32 4294901760, %v2836_v23 }
  0x38   : > { %v689_v49 = vsub.f32 %v2836_v23, %v688_v38 }
  0x39   : > { %469 = vperm.xlu1 %2419, %v377_v20   ;;  %v499_v20 = vld [vmem:[%s3766_s3 + $0x10] sm:$0xff] }
  0x3a   : > { %2421 = vset.pattern.permute.xlu2 %v2557_v1  ;;  %2423 = vset.pattern.permute.xlu0 %v2557_v1  ;;  %v2796_v1 = vsub.f32 %v503_v54, %v2784_v59  ;;  %v2838_v24 = vand.u32 4294901760, %v499_v20  ;;  %v690_v56 = vand.u32 4294901760, %v689_v49 }
  0x3b   : > { %449 = vperm.xlu2 %2421, %v372_v19  }
  0x3c   : > { %v670_v9 = vand.u32 4294901760, %v2796_v1  ;;  %v2850_v39 = vsub.f32 %v499_v20, %v2838_v24 }
  0x3e   : > { %v671_v19 = vsub.f32 %v2796_v1, %v670_v9  ;;  %v694_v54 = vand.u32 4294901760, %v2850_v39 }
  0x40   : > { %v672_v34 = vand.u32 4294901760, %v671_v19  ;;  %v695_v61 = vsub.f32 %v2850_v39, %v694_v54  ;;  %v702_v19 = vand.u32 4294901760, %v701_v4 }
  0x41   : > { %2422 = vset.pattern.permute.xlu1 %v2556_v0  ;;  %v2793_v0 = vand.u32 4294901760, %v502_v60 }
  0x42   : > { %397 = vperm.xlu1 %2422, %v373_v21   ;;  %2374 = vmatpush.msra.mxu3 %v672_v34  ;;  %v696_v3 = vand.u32 4294901760, %v695_v61 }
  0x43   : > { %453 = vperm.xlu2 %2421, %v373_v21   ;;  %v2807_v5 = vsub.f32 %v502_v60, %v2793_v0  ;;  %2359 = vmatpush.msra.mxu2 %v2793_v0  ;;  %v2869_v60 = vsub.f32 %v497_v42, %v2860_v50 }
  0x44   : > { %538 = vmatpush.msra.mxu0 %v2793_v0  ;;  %673 = vmatpush.msra.mxu1 %v672_v34 }
  0x45   : > { %v676_v16 = vand.u32 4294901760, %v2807_v5  ;;  %2360 = vmatpush.msra.mxu2 %v2809_v6  ;;  %v706_v2 = vand.u32 4294901760, %v2869_v60 }
  0x46   : > { %540 = vmatpush.msra.mxu0 %v2809_v6 }
  0x47   : > { %v677_v21 = vsub.f32 %v2807_v5, %v676_v16  ;;  %2361 = vmatpush.msra.mxu2 %v2821_v18  ;;  %v707_v15 = vsub.f32 %v2869_v60, %v706_v2 }
  0x48   : > { %542 = vmatpush.msra.mxu0 %v2821_v18 }
  0x49   : > { %v678_v36 = vand.u32 4294901760, %v677_v21  ;;  %2362 = vmatpush.msra.mxu2 %v2838_v24  ;;  %v708_v20 = vand.u32 4294901760, %v707_v15 }
  0x4a   : > { %544 = vmatpush.msra.mxu0 %v2838_v24 }
  0x4b   : > { %2375 = vmatpush.msra.mxu3 %v678_v36  ;;  %679 = vmatpush.msra.mxu1 %v678_v36 }
  0x4c   : > { %2363 = vmatpush.msra.mxu2 %v2852_v40  ;;  %546 = vmatpush.msra.mxu0 %v2852_v40 }
  0x4d   : > { %2376 = vmatpush.msra.mxu3 %v684_v45  ;;  %685 = vmatpush.msra.mxu1 %v684_v45 }
  0x4e   : > { %2364 = vmatpush.msra.mxu2 %v2860_v50  ;;  %548 = vmatpush.msra.mxu0 %v2860_v50 }
  0x4f   : > { %2377 = vmatpush.msra.mxu3 %v690_v56  ;;  %691 = vmatpush.msra.mxu1 %v690_v56 }
  0x50   : > { %745 = vmatpush.msrb.mxu2 %v2669_v10  ;;  %916 = vmatpush.msrb.mxu0 %v616_v12  ;;  %v378_v10 = vld [vmem:[%s3764_s1] sm:$0x3] }
  0x51   : > { %2378 = vmatpush.msra.mxu3 %v696_v3  ;;  %697 = vmatpush.msra.mxu1 %v696_v3  ;;  %v2925_v12 = vld [vmem:[%s3765_s2] ss:$0 sm:$0xff] }
  0x52   : > { %748 = vmatpush.msrb.mxu2 %v2672_v11  ;;  %920 = vmatpush.msrb.mxu0 %v622_v13 }
  0x53   : > { %2379 = vmatpush.msra.mxu3 %v702_v19  ;;  %703 = vmatpush.msra.mxu1 %v702_v19 }
  0x54   : > { %751 = vmatpush.msrb.mxu2 %v2706_v28  ;;  %924 = vmatpush.msrb.mxu0 %v628_v31 }
  0x55   : > { %2380 = vmatpush.msra.mxu3 %v708_v20  ;;  %709 = vmatpush.msra.mxu1 %v708_v20 }
  0x56   : > { %754 = vmatpush.msrb.mxu2 %v2709_v29  ;;  %928 = vmatpush.msrb.mxu0 %v634_v32 }
  0x57   : > { %833 = vmatpush.msrb.mxu3 %v2663_v7  ;;  %1011 = vmatpush.msrb.mxu1 %v2663_v7  ;;  %v2910_v7 = vperm.slane %v378_v10, 0 }
  0x58   : > { %757 = vmatpush.msrb.mxu2 %v2712_v30  ;;  %932 = vmatpush.msrb.mxu0 %v640_v33 }
  0x59   : > { %835 = vmatpush.msrb.mxu3 %v2665_v8  ;;  %1013 = vmatpush.msrb.mxu1 %v2665_v8  ;;  %v2920_v8 = vperm.slane %v378_v10, 1 }
  0x5a   : > { %760 = vmatpush.msrb.mxu2 %v2741_v43  ;;  %936 = vmatpush.msrb.mxu0 %v646_v46 }
  0x5b   : > { %837 = vmatpush.msrb.mxu3 %v2699_v25  ;;  %1015 = vmatpush.msrb.mxu1 %v2699_v25 }
  0x5c   : > { %763 = vmatpush.msrb.mxu2 %v2752_v47  ;;  %940 = vmatpush.msrb.mxu0 %v652_v51 }
  0x5d   : > { %839 = vmatpush.msrb.mxu3 %v2701_v26  ;;  %1017 = vmatpush.msrb.mxu1 %v2701_v26 }
  0x5e   : > { %766 = vmatpush.msrb.mxu2 %v2766_v52  ;;  %944 = vmatpush.msrb.mxu0 %v658_v57 }
  0x5f   : > { %841 = vmatpush.msrb.mxu3 %v2703_v27  ;;  %1019 = vmatpush.msrb.mxu1 %v2703_v27 }
  0x60   : > { %769 = vmatpush.msrb.mxu2 %v2780_v58  ;;  %948 = vmatpush.msrb.mxu0 %v664_v63 }
  0x61   : > { %843 = vmatpush.msrb.mxu3 %v2735_v41  ;;  %1021 = vmatpush.msrb.mxu1 %v2735_v41 }
  0x62   : > { %772 = vmatpush.msrb.mxu2 %v2796_v1  ;;  %952 = vmatpush.msrb.mxu0 %v670_v9 }
  0x63   : > { %845 = vmatpush.msrb.mxu3 %v2743_v44  ;;  %1023 = vmatpush.msrb.mxu1 %v2743_v44 }
  0x64   : > { %775 = vmatpush.msrb.mxu2 %v2807_v5  ;;  %956 = vmatpush.msrb.mxu0 %v676_v16 }
  0x65   : > { %847 = vmatpush.msrb.mxu3 %v2754_v48  ;;  %1025 = vmatpush.msrb.mxu1 %v2754_v48 }
  0x66   : > { %778 = vmatpush.msrb.mxu2 %v2819_v17  ;;  %960 = vmatpush.msrb.mxu0 %v682_v22 }
  0x67   : > { %849 = vmatpush.msrb.mxu3 %v2768_v53  ;;  %1027 = vmatpush.msrb.mxu1 %v2768_v53 }
  0x68   : > { %781 = vmatpush.msrb.mxu2 %v2836_v23  ;;  %964 = vmatpush.msrb.mxu0 %v688_v38 }
  0x69   : > { %851 = vmatpush.msrb.mxu3 %v2784_v59  ;;  %1029 = vmatpush.msrb.mxu1 %v2784_v59 }
  0x6a   : > { %784 = vmatpush.msrb.mxu2 %v2850_v39  ;;  %968 = vmatpush.msrb.mxu0 %v694_v54 }
  0x6b   : > { %853 = vmatpush.msrb.mxu3 %v2793_v0  ;;  %1031 = vmatpush.msrb.mxu1 %v2793_v0 }
  0x6c   : > { %787 = vmatpush.msrb.mxu2 %v2866_v55  ;;  %972 = vmatpush.msrb.mxu0 %v700_v62 }
  0x6d   : > { %855 = vmatpush.msrb.mxu3 %v2809_v6  ;;  %1033 = vmatpush.msrb.mxu1 %v2809_v6 }
  0x6e   : > { %790 = vmatpush.msrb.mxu2 %v2869_v60  ;;  %976 = vmatpush.msrb.mxu0 %v706_v2 }
  0x6f   : > { %857 = vmatpush.msrb.mxu3 %v2821_v18  ;;  %1035 = vmatpush.msrb.mxu1 %v2821_v18 }
  0x71   : > { %859 = vmatpush.msrb.mxu3 %v2838_v24  ;;  %1037 = vmatpush.msrb.mxu1 %v2838_v24 }
  0x73   : > { %v462_v14 = vpop.permute.xlu2 %461  ;;  %861 = vmatpush.msrb.mxu3 %v2852_v40  ;;  %1039 = vmatpush.msrb.mxu1 %v2852_v40 }
  0x74   : > { %v478_v28 = vmul.f32 %v2920_v8, %v462_v14 }
  0x75   : > { %863 = vmatpush.msrb.mxu3 %v2860_v50  ;;  %1041 = vmatpush.msrb.mxu1 %v2860_v50 }
  0x7b   : > { %v442_v11 = vpop.permute.xlu2 %441 }
  0x7c   : > { %v473_v46 = vmul.f32 %v2920_v8, %v442_v11 }
  0x84   : > { %v388_v30 = vpop.permute.xlu2 %387 }
  0x85   : > { %v422_v17 = vmul.f32 %v2910_v7, %v388_v30 }
  0x87   : > { %v433_v35 = vadd.f32 %v2925_v12, %v422_v17 }
  0x8a   : > { %v408_v13 = vpop.permute.xlu1 %407  ;;  %v403_v25 = vpop.permute.xlu0 %402 }
  0x8b   : > { %v426_v26 = vmul.f32 %v2910_v7, %v408_v13  ;;  %v425_v29 = vmul.f32 %v2910_v7, %v403_v25 }
  0x8c   : > { %v418_v53 = vpop.permute.xlu2 %417 }
  0x8d   : > { %v437_v27 = vadd.f32 %v2925_v12, %v426_v26  ;;  %v436_v43 = vadd.f32 %v2925_v12, %v425_v29  ;;  %v428_v61 = vmul.f32 %v2910_v7, %v418_v53 }
  0x8f   : > { %v486_v31 = vadd.f32 %v478_v28, %v437_v27  ;;  %v439_v19 = vadd.f32 %v2925_v12, %v428_v61 }
  0x91   : > { %2428 = vtanh.f32 %v486_v31 }
  0x92   : > { %v383_v32 = vpop.permute.xlu1 %382 }
  0x93   : > { %v421_v33 = vmul.f32 %v2910_v7, %v383_v32  ;;  %v458_v41 = vpop.permute.xlu0 %457 }
  0x94   : > { %v477_v44 = vmul.f32 %v2920_v8, %v458_v41 }
  0x95   : > { %v432_v47 = vadd.f32 %v2925_v12, %v421_v33  ;;  %v450_v37 = vpop.permute.xlu2 %449 }
  0x96   : > { %v485_v48 = vadd.f32 %v477_v44, %v436_v43  ;;  %v475_v40 = vmul.f32 %v2920_v8, %v450_v37  ;;  %v1095_v37 = vld [vmem:[#allocation2 + $0x60] sm:$0xff] }
  0x97   : > { %v481_v51 = vadd.f32 %v473_v46, %v432_v47  ;;  %v2429_v59 = vpop.eup %2428 }
  0x98   : > { %2430 = vtanh.f32 %v485_v48  ;;  %v2990_v16 = vand.u32 4294901760, %v2429_v59 }
  0x99   : > { %2432 = vtanh.f32 %v481_v51 }
  0x9a   : > { %v413_v52 = vpop.permute.xlu1 %412  ;;  %v3007_v34 = vsub.f32 %v2429_v59, %v2990_v16 }
  0x9b   : > { %v427_v57 = vmul.f32 %v2910_v7, %v413_v52  ;;  %v466_v58 = vpop.permute.xlu0 %465 }
  0x9c   : > { %v479_v63 = vmul.f32 %v2920_v8, %v466_v58  ;;  %v591_v60 = vand.u32 4294901760, %v3007_v34 }
  0x9d   : > { %v438_v0 = vadd.f32 %v2925_v12, %v427_v57  ;;  %v454_v30 = vpop.permute.xlu2 %453 }
  0x9e   : > { %v2431_v1 = vpop.eup %2430  ;;  %v592_v14 = vsub.f32 %v3007_v34, %v591_v60  ;;  %v476_v47 = vmul.f32 %v2920_v8, %v454_v30  ;;  %v1091_v30 = vld [vmem:[#allocation2 + $0x40] sm:$0xff] }
  0x9f   : > { %v2433_v5 = vpop.eup %2432  ;;  %v487_v6 = vadd.f32 %v479_v63, %v438_v0  ;;  %v2988_v9 = vand.u32 4294901760, %v2431_v1 }
  0xa0   : > { %v2993_v18 = vand.u32 4294901760, %v2433_v5  ;;  %v593_v13 = vand.u32 4294901760, %v592_v14 }
  0xa1   : > { %2434 = vtanh.f32 %v487_v6  ;;  %727 = vmatmul.f32.vlgmr.msra.gmra.mxu3 %v2988_v9  ;;  %v2999_v21 = vsub.f32 %v2431_v1, %v2988_v9 }
  0xa2   : > { %711 = vmatmul.f32.vlgmr.msra.gmra.mxu1 %v2993_v18  ;;  %v3003_v22 = vsub.f32 %v2433_v5, %v2993_v18 }
  0xa3   : > { %v446_v23 = vpop.permute.xlu1 %445  ;;  %v583_v24 = vand.u32 4294901760, %v2999_v21 }
  0xa4   : > { %v474_v36 = vmul.f32 %v2920_v8, %v446_v23  ;;  %v393_v38 = vpop.permute.xlu0 %392  ;;  %v551_v39 = vand.u32 4294901760, %v3003_v22 }
  0xa5   : > { %v423_v42 = vmul.f32 %v2910_v7, %v393_v38  ;;  %v584_v45 = vsub.f32 %v2999_v21, %v583_v24 }
  0xa6   : > { %v482_v49 = vadd.f32 %v474_v36, %v433_v35  ;;  %v552_v50 = vsub.f32 %v3003_v22, %v551_v39  ;;  %v1096_v36 = vld [vmem:[#allocation2 + $0x68] sm:$0xff] }
  0xa7   : > { %v2435_v54 = vpop.eup %2434  ;;  %v434_v55 = vadd.f32 %v2925_v12, %v423_v42  ;;  %v585_v56 = vand.u32 4294901760, %v584_v45 }
  0xa8   : > { %2436 = vtanh.f32 %v482_v49  ;;  %v553_v62 = vand.u32 4294901760, %v552_v50  ;;  %v3023_v2 = vand.u32 4294901760, %v2435_v54  ;;  %v3092_v50 = vand.u32 4294901760, %v1095_v37 }
  0xa9   : > { %v483_v3 = vadd.f32 %v475_v40, %v434_v55  ;;  %586 = vmatmul.f32.vlgmr.msra.gmra.mxu2 %v585_v56  ;;  %731 = vmatmul.f32.gmra.mxu3 %v2990_v16  ;;  %v3082_v40 = vand.u32 4294901760, %v1096_v36 }
  0xaa   : > { %554 = vmatmul.f32.vlgmr.msra.gmra.mxu0 %v553_v62  ;;  %v3030_v15 = vsub.f32 %v2435_v54, %v3023_v2 }
  0xab   : > { %2438 = vtanh.f32 %v483_v3  ;;  %v470_v4 = vpop.permute.xlu1 %469  ;;  %v3090_v49 = vsub.f32 %v1096_v36, %v3082_v40  ;;  %v1093_v3 = vld [vmem:[#allocation2 + $0x50] sm:$0xff]  ;;  %v1086_v36 = vld [vmem:[#allocation2 + $0x18] sm:$0xff] }
  0xac   : > { %v480_v20 = vmul.f32 %v2920_v8, %v470_v4  ;;  %v599_v26 = vand.u32 4294901760, %v3030_v15 }
  0xad   : > { %v1214_v55 = vand.u32 4294901760, %v3090_v49 }
  0xae   : > { %v2437_v10 = vpop.eup %2436  ;;  %v488_v11 = vadd.f32 %v480_v20, %v439_v19  ;;  %v600_v32 = vsub.f32 %v3030_v15, %v599_v26 }
  0xaf   : > { %v557_v25 = vand.u32 4294901760, %v2437_v10  ;;  %v1215_v56 = vsub.f32 %v3090_v49, %v1214_v55 }
  0xb0   : > { %2440 = vtanh.f32 %v488_v11  ;;  %v601_v53 = vand.u32 4294901760, %v600_v32  ;;  %v3140_v32 = vand.u32 4294901760, %v1091_v30 }
  0xb1   : > { %v2439_v28 = vpop.eup %2438  ;;  %594 = vmatmul.f32.gmra.mxu2 %v593_v13  ;;  %715 = vmatmul.f32.gmra.mxu1 %v557_v25  ;;  %v558_v27 = vsub.f32 %v2437_v10, %v557_v25  ;;  %v1216_v61 = vand.u32 4294901760, %v1215_v56  ;;  %v3204_v56 = vand.u32 4294901760, %v1086_v36 }
  0xb2   : > { %735 = vmatmul.f32.gmra.mxu3 %v3023_v2  ;;  %v565_v29 = vand.u32 4294901760, %v2439_v28 }
  0xb3   : > { %v559_v31 = vand.u32 4294901760, %v558_v27 }
  0xb4   : > { %v398_v33 = vpop.permute.xlu1 %397  ;;  %v566_v41 = vsub.f32 %v2439_v28, %v565_v29 }
  0xb5   : > { %v424_v43 = vmul.f32 %v2910_v7, %v398_v33  ;;  %v560_v44 = vsub.f32 %v558_v27, %v559_v31 }
  0xb6   : > { %v2441_v46 = vpop.eup %2440  ;;  %v567_v48 = vand.u32 4294901760, %v566_v41 }
  0xb7   : > { %v435_v51 = vadd.f32 %v2925_v12, %v424_v43  ;;  %v561_v52 = vand.u32 4294901760, %v560_v44  ;;  %v605_v57 = vand.u32 4294901760, %v2441_v46  ;;  %v3149_v44 = vsub.f32 %v1091_v30, %v3140_v32 }
  0xb8   : > { %v568_v59 = vsub.f32 %v566_v41, %v567_v48 }
  0xb9   : > { %v484_v58 = vadd.f32 %v476_v47, %v435_v51  ;;  %562 = vmatmul.f32.gmra.mxu0 %v561_v52  ;;  %602 = vmatmul.f32.gmra.mxu2 %v601_v53  ;;  %v606_v63 = vsub.f32 %v2441_v46, %v605_v57  ;;  %v1090_v46 = vld [vmem:[#allocation2 + $0x38] sm:$0xff]  ;;  %v1244_v52 = vand.u32 4294901760, %v3149_v44 }
  0xba   : > { %739 = vmatmul.f32.gmra.mxu3 %v605_v57  ;;  %719 = vmatmul.f32.gmra.mxu1 %v565_v29  ;;  %v569_v7 = vand.u32 4294901760, %v568_v59 }
  0xbb   : > { %2442 = vtanh.f32 %v484_v58  ;;  %v607_v0 = vand.u32 4294901760, %v606_v63  ;;  %v1245_v58 = vsub.f32 %v3149_v44, %v1244_v52 }
  0xbd   : > { %v608_v1 = vsub.f32 %v606_v63, %v607_v0 }
  0xbf   : > { %v609_v5 = vand.u32 4294901760, %v608_v1 }
  0xc1   : > { %v2443_v6 = vpop.eup %2442  ;;  %570 = vmatmul.f32.gmra.mxu0 %v569_v7  ;;  %610 = vmatmul.f32.gmra.mxu2 %v609_v5  ;;  %v1246_v7 = vand.u32 4294901760, %v1245_v58 }
  0xc2   : > { %867 = vmatmul.f32.vlgmr.msrb.gmra.mxu3 %v551_v39  ;;  %v573_v8 = vand.u32 4294901760, %v2443_v6 }
  0xc4   : > { %723 = vmatmul.f32.gmra.mxu1 %v573_v8  ;;  %v574_v12 = vsub.f32 %v2443_v6, %v573_v8 }
  0xc6   : > { %v575_v17 = vand.u32 4294901760, %v574_v12 }
  0xc8   : > { %v576_v23 = vsub.f32 %v574_v12, %v575_v17 }
  0xc9   : > { %793 = vmatmul.f32.vlgmr.msrb.gmra.mxu2 %v3003_v22 }
  0xca   : > { %873 = vmatmul.f32.gmra.mxu3 %v559_v31  ;;  %v577_v35 = vand.u32 4294901760, %v576_v23 }
  0xcc   : > { %578 = vmatmul.f32.gmra.mxu0 %v577_v35  ;;  %1043 = vmatmul.f32.vlgmr.msrb.gmra.mxu1 %v2993_v18 }
  0xd1   : > { %798 = vmatmul.f32.gmra.mxu2 %v558_v27 }
  0xd2   : > { %879 = vmatmul.f32.gmra.mxu3 %v567_v48  ;;  %v3155_v48 = vand.u32 4294901760, %v1090_v46 }
  0xd4   : > { %978 = vmatmul.f32.vlgmr.msrb.gmra.mxu0 %v2993_v18  ;;  %1047 = vmatmul.f32.gmra.mxu1 %v557_v25  ;;  %v1098_v18 = vld [vmem:[#allocation2 + $0x78] sm:$0xff]  ;;  %v3167_v59 = vsub.f32 %v1090_v46, %v3155_v48 }
  0xd5   : > { %v3062_v22 = vand.u32 4294901760, %v1098_v18 }
  0xd6   : > { %v1250_v1 = vand.u32 4294901760, %v3167_v59 }
  0xd7   : > { %1104 = vmatpush.msra.mxu2 %v3062_v22  ;;  %1419 = vmatpush.msra.mxu1 %v3062_v22 }
  0xd8   : > { %v1251_v23 = vsub.f32 %v3167_v59, %v1250_v1 }
  0xd9   : > { %803 = vmatmul.f32.gmra.mxu2 %v566_v41 }
  0xda   : > { %885 = vmatmul.f32.gmra.mxu3 %v575_v17  ;;  %v1087_v17 = vld [vmem:[#allocation2 + $0x20] sm:$0xff] }
  0xdc   : > { %982 = vmatmul.f32.gmra.mxu0 %v557_v25  ;;  %1051 = vmatmul.f32.gmra.mxu1 %v565_v29 }
  0xe1   : > { %808 = vmatmul.f32.gmra.mxu2 %v574_v12 }
  0xe2   : > { %891 = vmatmul.f32.gmra.mxu3 %v583_v24 }
  0xe4   : > { %986 = vmatmul.f32.gmra.mxu0 %v565_v29  ;;  %1055 = vmatmul.f32.gmra.mxu1 %v573_v8 }
  0xe9   : > { %813 = vmatmul.f32.gmra.mxu2 %v2999_v21  ;;  %v1097_v21 = vld [vmem:[#allocation2 + $0x70] sm:$0xff] }
  0xea   : > { %897 = vmatmul.f32.gmra.mxu3 %v591_v60  ;;  %v3064_v24 = vand.u32 4294901760, %v1097_v21  ;;  %v3103_v60 = vsub.f32 %v1095_v37, %v3092_v50 }
  0xec   : > { %990 = vmatmul.f32.gmra.mxu0 %v573_v8  ;;  %1059 = vmatmul.f32.gmra.mxu1 %v2988_v9  ;;  %v1220_v62 = vand.u32 4294901760, %v3103_v60 }
  0xed   : > { %1106 = vmatpush.msra.mxu2 %v3064_v24  ;;  %1421 = vmatpush.msra.mxu1 %v3064_v24 }
  0xee   : > { %v1221_v14 = vsub.f32 %v3103_v60, %v1220_v62 }
  0xef   : > { %1108 = vmatpush.msra.mxu2 %v3082_v40  ;;  %1423 = vmatpush.msra.mxu1 %v3082_v40 }
  0xf0   : > { %v1222_v20 = vand.u32 4294901760, %v1221_v14 }
  0xf1   : > { %818 = vmatmul.f32.gmra.mxu2 %v3007_v34  ;;  %v3074_v34 = vsub.f32 %v1097_v21, %v3064_v24  ;;  %1425 = vmatpush.msra.mxu1 %v3092_v50  ;;  %v3192_v21 = vand.u32 4294901760, %v1087_v17 }
  0xf2   : > { %903 = vmatmul.f32.gmra.mxu3 %v599_v26  ;;  %1110 = vmatpush.msra.mxu2 %v3092_v50  ;;  %v1092_v26 = vld [vmem:[#allocation2 + $0x48] sm:$0xff] }
  0xf3   : > { %v1208_v39 = vand.u32 4294901760, %v3074_v34  ;;  %v3131_v27 = vand.u32 4294901760, %v1092_v26 }
  0xf4   : > { %994 = vmatmul.f32.gmra.mxu0 %v2988_v9  ;;  %1063 = vmatmul.f32.gmra.mxu1 %v2990_v16  ;;  %v3068_v9 = vsub.f32 %v1098_v18, %v3062_v22 }
  0xf5   : > { %v1209_v45 = vsub.f32 %v3074_v34, %v1208_v39  ;;  %v3138_v31 = vsub.f32 %v1092_v26, %v3131_v27 }
  0xf6   : > { %1331 = vmatpush.msra.mxu0 %v3068_v9 }
  0xf7   : > { %v1210_v54 = vand.u32 4294901760, %v1209_v45  ;;  %v1238_v43 = vand.u32 4294901760, %v3138_v31 }
  0xf8   : > { %1334 = vmatpush.msra.mxu0 %v3074_v34 }
  0xf9   : > { %823 = vmatmul.f32.gmra.mxu2 %v3030_v15  ;;  %v3112_v15 = vand.u32 4294901760, %v1093_v3  ;;  %v1239_v47 = vsub.f32 %v3138_v31, %v1238_v43 }
  0xfa   : > { %909 = vmatmul.f32.gmra.mxu3 %v607_v0  ;;  %1337 = vmatpush.msra.mxu0 %v3090_v49  ;;  %v1088_v0 = vld [vmem:[#allocation2 + $0x28] sm:$0xff] }
  0xfb   : > { %v3123_v11 = vsub.f32 %v1093_v3, %v3112_v15  ;;  %v1240_v53 = vand.u32 4294901760, %v1239_v47  ;;  %v3176_v6 = vand.u32 4294901760, %v1088_v0 }
  0xfc   : > { %998 = vmatmul.f32.gmra.mxu0 %v2990_v16  ;;  %1067 = vmatmul.f32.gmra.mxu1 %v3023_v2  ;;  %v1202_v16 = vand.u32 4294901760, %v3068_v9 }
  0xfd   : > { %1340 = vmatpush.msra.mxu0 %v3103_v60  ;;  %v1232_v25 = vand.u32 4294901760, %v3123_v11  ;;  %v3190_v18 = vsub.f32 %v1088_v0, %v3176_v6 }
  0xfe   : > { %v1203_v38 = vsub.f32 %v3068_v9, %v1202_v16 }
  0xff   : > { %v1233_v29 = vsub.f32 %v3123_v11, %v1232_v25 }
 0x100   : > { %v1204_v42 = vand.u32 4294901760, %v1203_v38 }
 0x101   : > { %828 = vmatmul.f32.gmra.mxu2 %v606_v63  ;;  %v1234_v33 = vand.u32 4294901760, %v1233_v29 }
 0x102   : > { %1205 = vmatpush.msra.mxu3 %v1204_v42  ;;  %v1252_v42 = vand.u32 4294901760, %v1251_v23 }
 0x104   : > { %1002 = vmatmul.f32.gmra.mxu0 %v3023_v2  ;;  %1071 = vmatmul.f32.gmra.mxu1 %v605_v57  ;;  %v1094_v2 = vld [vmem:[#allocation2 + $0x58] sm:$0xff] }
 0x105   : > { %1211 = vmatpush.msra.mxu3 %v1210_v54  ;;  %v3107_v4 = vand.u32 4294901760, %v1094_v2  ;;  %v1262_v54 = vand.u32 4294901760, %v3190_v18 }
 0x107   : > { %1217 = vmatpush.msra.mxu3 %v1216_v61  ;;  %1112 = vmatpush.msra.mxu2 %v3107_v4  ;;  %v3116_v19 = vsub.f32 %v1094_v2, %v3107_v4  ;;  %v3208_v61 = vsub.f32 %v1087_v17, %v3192_v21  ;;  %v1085_v2 = vld [vmem:[#allocation2 + $0x10] sm:$0xff]  ;;  %v1263_v14 = vsub.f32 %v3190_v18, %v1262_v54 }
 0x108   : > { %1427 = vmatpush.msra.mxu1 %v3107_v4 }
 0x109   : > { %v1226_v10 = vand.u32 4294901760, %v3116_v19  ;;  %1114 = vmatpush.msra.mxu2 %v3112_v15  ;;  %1343 = vmatpush.msra.mxu0 %v3116_v19  ;;  %v1268_v26 = vand.u32 4294901760, %v3208_v61  ;;  %v1264_v29 = vand.u32 4294901760, %v1263_v14 }
 0x10a   : > { %1223 = vmatpush.msra.mxu3 %v1222_v20  ;;  %1429 = vmatpush.msra.mxu1 %v3112_v15  ;;  %v3215_v20 = vsub.f32 %v1086_v36, %v3204_v56 }
 0x10b   : > { %v1227_v13 = vsub.f32 %v3116_v19, %v1226_v10  ;;  %1346 = vmatpush.msra.mxu0 %v3123_v11  ;;  %1116 = vmatpush.msra.mxu2 %v3131_v27 }
 0x10c   : > { %1006 = vmatmul.f32.gmra.mxu0 %v605_v57  ;;  %1431 = vmatpush.msra.mxu1 %v3131_v27  ;;  %v1089_v57 = vld [vmem:[#allocation2 + $0x30] sm:$0xff]  ;;  %v1274_v30 = vand.u32 4294901760, %v3215_v20 }
 0x10d   : > { %v1228_v28 = vand.u32 4294901760, %v1227_v13  ;;  %1118 = vmatpush.msra.mxu2 %v3140_v32  ;;  %1349 = vmatpush.msra.mxu0 %v3138_v31  ;;  %v3169_v63 = vand.u32 4294901760, %v1089_v57  ;;  %v3217_v13 = vand.u32 4294901760, %v1085_v2 }
 0x10e   : > { %1433 = vmatpush.msra.mxu1 %v3140_v32  ;;  %v1275_v0 = vsub.f32 %v3215_v20, %v1274_v30 }
 0x10f   : > { %1229 = vmatpush.msra.mxu3 %v1228_v28  ;;  %1352 = vmatpush.msra.mxu0 %v3149_v44  ;;  %v3174_v5 = vsub.f32 %v1089_v57, %v3169_v63  ;;  %v1084_v28 = vld [vmem:[#allocation2 + $0x8] sm:$0xff]  ;;  %v1083_v57 = vld [vmem:[#allocation2] sm:$0xff] }
 0x110   : > { %1120 = vmatpush.msra.mxu2 %v3155_v48  ;;  %1435 = vmatpush.msra.mxu1 %v3155_v48  ;;  %v3227_v46 = vand.u32 4294901760, %v1084_v28  ;;  %v3248_v36 = vand.u32 4294901760, %v1083_v57 }
 0x111   : > { %1235 = vmatpush.msra.mxu3 %v1234_v33  ;;  %1355 = vmatpush.msra.mxu0 %v3167_v59  ;;  %v1256_v35 = vand.u32 4294901760, %v3174_v5  ;;  %v3225_v33 = vsub.f32 %v1085_v2, %v3217_v13  ;;  %v1276_v2 = vand.u32 4294901760, %v1275_v0 }
 0x112   : > { %1122 = vmatpush.msra.mxu2 %v3169_v63  ;;  %1437 = vmatpush.msra.mxu1 %v3169_v63  ;;  %v3244_v17 = vsub.f32 %v1084_v28, %v3227_v46  ;;  %v3259_v28 = vsub.f32 %v1083_v57, %v3248_v36 }
 0x113   : > { %1241 = vmatpush.msra.mxu3 %v1240_v53  ;;  %1358 = vmatpush.msra.mxu0 %v3174_v5  ;;  %v1257_v45 = vsub.f32 %v3174_v5, %v1256_v35  ;;  %v1269_v53 = vsub.f32 %v3208_v61, %v1268_v26 }
 0x114   : > { %1124 = vmatpush.msra.mxu2 %v3176_v6  ;;  %1439 = vmatpush.msra.mxu1 %v3176_v6  ;;  %v3773_v14 = vand.u32 4294901760, %v3244_v17  ;;  %v1292_v0 = vand.u32 4294901760, %v3259_v28 }
 0x115   : > { %1247 = vmatpush.msra.mxu3 %v1246_v7  ;;  %1361 = vmatpush.msra.mxu0 %v3190_v18  ;;  %v1258_v3 = vand.u32 4294901760, %v1257_v45  ;;  %v1280_v7 = vand.u32 4294901760, %v3225_v33  ;;  %v1270_v23 = vand.u32 4294901760, %v1269_v53 }
 0x116   : > { %1126 = vmatpush.msra.mxu2 %v3192_v21  ;;  %1441 = vmatpush.msra.mxu1 %v3192_v21  ;;  %v1287_v53 = vsub.f32 %v3244_v17, %v3773_v14 }
 0x117   : > { %1253 = vmatpush.msra.mxu3 %v1252_v42  ;;  %1364 = vmatpush.msra.mxu0 %v3208_v61 }
 0x118   : > { %1128 = vmatpush.msra.mxu2 %v3204_v56  ;;  %1443 = vmatpush.msra.mxu1 %v3204_v56 }
 0x119   : > { %1259 = vmatpush.msra.mxu3 %v1258_v3  ;;  %1367 = vmatpush.msra.mxu0 %v3215_v20  ;;  %v1281_v3 = vsub.f32 %v3225_v33, %v1280_v7 }
 0x11a   : > { %1130 = vmatpush.msra.mxu2 %v3217_v13  ;;  %1445 = vmatpush.msra.mxu1 %v3217_v13 }
 0x11b   : > { %1265 = vmatpush.msra.mxu3 %v1264_v29  ;;  %1370 = vmatpush.msra.mxu0 %v3225_v33  ;;  %v1282_v29 = vand.u32 4294901760, %v1281_v3  ;;  %v1293_v3 = vsub.f32 %v3259_v28, %v1292_v0 }
 0x11c   : > { %1132 = vmatpush.msra.mxu2 %v3227_v46  ;;  %1447 = vmatpush.msra.mxu1 %v3227_v46 }
 0x11d   : > { %1271 = vmatpush.msra.mxu3 %v1270_v23  ;;  %1373 = vmatpush.msra.mxu0 %v3244_v17  ;;  %v1288_v23 = vand.u32 4294901760, %v1287_v53 }
 0x11e   : > { %1449 = vmatpush.msra.mxu1 %v3248_v36  ;;  %1134 = vmatpush.msra.mxu2 %v3248_v36 }
 0x11f   : > { %v3157_v51 = vpop.f32.mrf.mxu1  ;;  %1277 = vmatpush.msra.mxu3 %v1276_v2  ;;  %1376 = vmatpush.msra.mxu0 %v3259_v28  ;;  %v1294_v2 = vand.u32 4294901760, %v1293_v3 }
 0x120   : > { %1502 = vmatpush.msrb.mxu2 %v1202_v16 }
 0x121   : > { %1283 = vmatpush.msra.mxu3 %v1282_v29  ;;  %v3290_v29 = vld [vmem:[%s3767_s4] ss:$0 sm:$0xff] }
 0x122   : > { %1506 = vmatpush.msrb.mxu2 %v1208_v39 }
 0x123   : > { %1289 = vmatpush.msra.mxu3 %v1288_v23 }
 0x124   : > { %v3143_v41 = vpop.f32.mrf.mxu3  ;;  %1510 = vmatpush.msrb.mxu2 %v1214_v55 }
 0x125   : > { %1295 = vmatpush.msra.mxu3 %v1294_v2 }
 0x126   : > { %1514 = vmatpush.msrb.mxu2 %v1220_v62 }
 0x127   : > { %v3196_v37 = vpop.f32.mrf.mxu0  ;;  %1597 = vmatpush.msrb.mxu3 %v3062_v22 }
 0x128   : > { %1518 = vmatpush.msrb.mxu2 %v1226_v10  ;;  %v556_v22 = vadd.f32 %v3290_v29, %v3196_v37 }
 0x129   : > { %1599 = vmatpush.msrb.mxu3 %v3064_v24 }
 0x12a   : > { %1522 = vmatpush.msrb.mxu2 %v1232_v25 }
 0x12b   : > { %1601 = vmatpush.msrb.mxu3 %v3082_v40  ;;  %v713_v40 = vadd.f32 %v3157_v51, %v556_v22 }
 0x12c   : > { %v3179_v8 = vpop.f32.mrf.mxu2  ;;  %v3181_v12 = vpop.f32.mrf.mxu3  ;;  %1526 = vmatpush.msrb.mxu2 %v1238_v43 }
 0x12d   : > { %1603 = vmatpush.msrb.mxu3 %v3092_v50 }
 0x12e   : > { %v3198_v38 = vpop.f32.mrf.mxu1  ;;  %1530 = vmatpush.msrb.mxu2 %v1244_v52 }
 0x12f   : > { %1605 = vmatpush.msrb.mxu3 %v3107_v4 }
 0x130   : > { %1534 = vmatpush.msrb.mxu2 %v1250_v1 }
 0x131   : > { %1607 = vmatpush.msrb.mxu3 %v3112_v15 }
 0x132   : > { %1538 = vmatpush.msrb.mxu2 %v1256_v35 }
 0x133   : > { %1609 = vmatpush.msrb.mxu3 %v3131_v27 }
 0x134   : > { %v3230_v47 = vpop.f32.mrf.mxu2  ;;  %1542 = vmatpush.msrb.mxu2 %v1262_v54 }
 0x135   : > { %v3237_v58 = vpop.f32.mrf.mxu3  ;;  %1611 = vmatpush.msrb.mxu3 %v3140_v32 }
 0x136   : > { %v563_v42 = vpop.f32.mrf.mxu0  ;;  %1546 = vmatpush.msrb.mxu2 %v1268_v26 }
 0x137   : > { %v3251_v45 = vpop.f32.mrf.mxu1  ;;  %v564_v62 = vadd.f32 %v3290_v29, %v563_v42  ;;  %1613 = vmatpush.msrb.mxu3 %v3155_v48  ;;  %v3781_v48 = vand.u32 4294901760, %v3244_v17 }
 0x138   : > { %1550 = vmatpush.msrb.mxu2 %v1274_v30 }
 0x139   : > { %v717_v11 = vadd.f32 %v3198_v38, %v564_v62  ;;  %1615 = vmatpush.msrb.mxu3 %v3169_v63 }
 0x13a   : > { %1554 = vmatpush.msrb.mxu2 %v1280_v7 }
 0x13b   : > { %1617 = vmatpush.msrb.mxu3 %v3176_v6 }
 0x13c   : > { %v3271_v57 = vpop.f32.mrf.mxu2  ;;  %1558 = vmatpush.msrb.mxu2 %v3781_v48 }
 0x13d   : > { %v3276_v14 = vpop.f32.mrf.mxu3  ;;  %1619 = vmatpush.msrb.mxu3 %v3192_v21 }
 0x13e   : > { %v571_v9 = vpop.f32.mrf.mxu0  ;;  %1562 = vmatpush.msrb.mxu2 %v1292_v0 }
 0x13f   : > { %v572_v43 = vadd.f32 %v3290_v29, %v571_v9  ;;  %1621 = vmatpush.msrb.mxu3 %v3204_v56 }
 0x141   : > { %v3282_v16 = vpop.f32.mrf.mxu1  ;;  %v721_v63 = vadd.f32 %v3251_v45, %v572_v43  ;;  %1623 = vmatpush.msrb.mxu3 %v3217_v13 }
 0x143   : > { %1625 = vmatpush.msrb.mxu3 %v3227_v46 }
 0x144   : > { %v3295_v34 = vpop.f32.mrf.mxu2 }
 0x145   : > { %v868_v39 = vpop.f32.mrf.mxu3  ;;  %1627 = vmatpush.msrb.mxu3 %v3248_v36  ;;  %v588_v36 = vadd.f32 %v3290_v29, %v3179_v8 }
 0x147   : > { %v729_v9 = vadd.f32 %v3143_v41, %v588_v36 }
 0x149   : > { %v579_v24 = vpop.f32.mrf.mxu0  ;;  %v1044_v49 = vpop.f32.mrf.mxu1 }
 0x14a   : > { %v580_v37 = vadd.f32 %v3290_v29, %v579_v24 }
 0x14c   : > { %v794_v55 = vpop.f32.mrf.mxu2  ;;  %v725_v26 = vadd.f32 %v3282_v16, %v580_v37 }
 0x14d   : > { %v795_v60 = vadd.f32 %v794_v55, %v713_v40  ;;  %v874_v50 = vpop.f32.mrf.mxu3 }
 0x14f   : > { %v869_v4 = vadd.f32 %v868_v39, %v795_v60  ;;  %v596_v60 = vadd.f32 %v3290_v29, %v3230_v47 }
 0x151   : > { %v979_v15 = vpop.f32.mrf.mxu0  ;;  %v1048_v19 = vpop.f32.mrf.mxu1 }
 0x152   : > { %v980_v10 = vadd.f32 %v979_v15, %v869_v4 }
 0x154   : > { %v1045_v25 = vadd.f32 %v1044_v49, %v980_v10  ;;  %v799_v27 = vpop.f32.mrf.mxu2  ;;  %v733_v10 = vadd.f32 %v3181_v12, %v596_v60 }
 0x155   : > { %v800_v31 = vadd.f32 %v799_v27, %v717_v11  ;;  %v880_v32 = vpop.f32.mrf.mxu3 }
 0x156   : > { %2444 = vtanh.f32 %v1045_v25 }
 0x157   : > { %v875_v44 = vadd.f32 %v874_v50, %v800_v31 }
 0x159   : > { %v983_v51 = vpop.f32.mrf.mxu0  ;;  %v1052_v52 = vpop.f32.mrf.mxu1 }
 0x15a   : > { %v984_v59 = vadd.f32 %v983_v51, %v875_v44  ;;  %v604_v44 = vadd.f32 %v3290_v29, %v3271_v57 }
 0x15c   : > { %v2445_v1 = vpop.eup %2444  ;;  %v1049_v5 = vadd.f32 %v1048_v19, %v984_v59  ;;  %v804_v6 = vpop.f32.mrf.mxu2 }
 0x15d   : > { %v805_v35 = vadd.f32 %v804_v6, %v721_v63  ;;  %v3338_v18 = vand.u32 4294901760, %v2445_v1  ;;  %v886_v21 = vpop.f32.mrf.mxu3 }
 0x15e   : > { %2446 = vtanh.f32 %v1049_v5 }
 0x15f   : > { %1297 = vmatmul.f32.vlgmr.msra.gmra.mxu3 %v3338_v18  ;;  %v881_v38 = vadd.f32 %v880_v32, %v805_v35  ;;  %v1136_v54 = vsub.f32 %v2445_v1, %v3338_v18  ;;  %v737_v1 = vadd.f32 %v3237_v58, %v604_v44 }
 0x161   : > { %v987_v56 = vpop.f32.mrf.mxu0  ;;  %1379 = vmatmul.f32.vlgmr.msra.gmra.mxu0 %v1136_v54  ;;  %v1137_v61 = vand.u32 4294901760, %v1136_v54  ;;  %v1056_v13 = vpop.f32.mrf.mxu1 }
 0x162   : > { %v988_v20 = vadd.f32 %v987_v56, %v881_v38  ;;  %v612_v56 = vadd.f32 %v3290_v29, %v3295_v34 }
 0x163   : > { %1453 = vmatmul.f32.vlgmr.msra.gmra.mxu1 %v1137_v61  ;;  %v1138_v30 = vsub.f32 %v1136_v54, %v1137_v61 }
 0x164   : > { %v2447_v33 = vpop.eup %2446  ;;  %v1053_v46 = vadd.f32 %v1052_v52, %v988_v20  ;;  %v809_v7 = vpop.f32.mrf.mxu2 }
 0x165   : > { %v810_v17 = vadd.f32 %v809_v7, %v725_v26  ;;  %v1139_v42 = vand.u32 4294901760, %v1138_v30  ;;  %v3346_v45 = vand.u32 4294901760, %v2447_v33  ;;  %v892_v0 = vpop.f32.mrf.mxu3 }
 0x166   : > { %2448 = vtanh.f32 %v1053_v46 }
 0x167   : > { %1140 = vmatmul.f32.vlgmr.msra.gmra.mxu2 %v1139_v42  ;;  %1301 = vmatmul.f32.gmra.mxu3 %v3346_v45  ;;  %v887_v28 = vadd.f32 %v886_v21, %v810_v17  ;;  %v1144_v53 = vsub.f32 %v2447_v33, %v3346_v45  ;;  %v741_v33 = vadd.f32 %v3276_v14, %v612_v56 }
 0x169   : > { %v991_v23 = vpop.f32.mrf.mxu0  ;;  %1384 = vmatmul.f32.gmra.mxu0 %v1144_v53  ;;  %v1145_v3 = vand.u32 4294901760, %v1144_v53  ;;  %v1060_v49 = vpop.f32.mrf.mxu1 }
 0x16a   : > { %v992_v2 = vadd.f32 %v991_v23, %v887_v28 }
 0x16b   : > { %1459 = vmatmul.f32.gmra.mxu1 %v1145_v3  ;;  %v1146_v16 = vsub.f32 %v1144_v53, %v1145_v3 }
 0x16c   : > { %v2449_v39 = vpop.eup %2448  ;;  %v1057_v22 = vadd.f32 %v1056_v13, %v992_v2  ;;  %v814_v24 = vpop.f32.mrf.mxu2 }
 0x16d   : > { %v815_v8 = vadd.f32 %v814_v24, %v729_v9  ;;  %v1147_v40 = vand.u32 4294901760, %v1146_v16  ;;  %v3353_v55 = vand.u32 4294901760, %v2449_v39  ;;  %v898_v15 = vpop.f32.mrf.mxu3 }
 0x16e   : > { %2450 = vtanh.f32 %v1057_v22 }
 0x16f   : > { %1148 = vmatmul.f32.gmra.mxu2 %v1147_v40  ;;  %1305 = vmatmul.f32.gmra.mxu3 %v3353_v55  ;;  %v893_v50 = vadd.f32 %v892_v0, %v815_v8  ;;  %v1152_v62 = vsub.f32 %v2449_v39, %v3353_v55 }
 0x171   : > { %v995_v41 = vpop.f32.mrf.mxu0  ;;  %1389 = vmatmul.f32.gmra.mxu0 %v1152_v62  ;;  %v1153_v4 = vand.u32 4294901760, %v1152_v62  ;;  %v1064_v48 = vpop.f32.mrf.mxu1 }
 0x172   : > { %v996_v19 = vadd.f32 %v995_v41, %v893_v50 }
 0x173   : > { %1465 = vmatmul.f32.gmra.mxu1 %v1153_v4  ;;  %v1154_v11 = vsub.f32 %v1152_v62, %v1153_v4 }
 0x174   : > { %v2451_v25 = vpop.eup %2450  ;;  %v1061_v27 = vadd.f32 %v1060_v49, %v996_v19  ;;  %v819_v31 = vpop.f32.mrf.mxu2 }
 0x175   : > { %v820_v32 = vadd.f32 %v819_v31, %v733_v10  ;;  %v1155_v47 = vand.u32 4294901760, %v1154_v11  ;;  %v3360_v43 = vand.u32 4294901760, %v2451_v25  ;;  %v904_v35 = vpop.f32.mrf.mxu3 }
 0x176   : > { %2452 = vtanh.f32 %v1061_v27 }
 0x177   : > { %1156 = vmatmul.f32.gmra.mxu2 %v1155_v47  ;;  %1309 = vmatmul.f32.gmra.mxu3 %v3360_v43  ;;  %v899_v51 = vadd.f32 %v898_v15, %v820_v32  ;;  %v1160_v52 = vsub.f32 %v2451_v25, %v3360_v43  ;;  %v1683_v25 = vld [vmem:[#allocation4 + $0x70] sm:$0xff]  ;;  %v1682_v47 = vld [vmem:[#allocation4 + $0x68] sm:$0xff] }
 0x178   : > { %v3395_v27 = vand.u32 4294901760, %v1683_v25  ;;  %v3405_v44 = vand.u32 4294901760, %v1682_v47 }
 0x179   : > { %v999_v12 = vpop.f32.mrf.mxu0  ;;  %1394 = vmatmul.f32.gmra.mxu0 %v1160_v52  ;;  %v1161_v59 = vand.u32 4294901760, %v1160_v52  ;;  %v1068_v58 = vpop.f32.mrf.mxu1 }
 0x17a   : > { %v1000_v63 = vadd.f32 %v999_v12, %v899_v51  ;;  %v3402_v32 = vsub.f32 %v1683_v25, %v3395_v27  ;;  %v1673_v25 = vld [vmem:[#allocation4 + $0x20] sm:$0xff] }
 0x17b   : > { %1471 = vmatmul.f32.gmra.mxu1 %v1161_v59  ;;  %v1162_v5 = vsub.f32 %v1160_v52, %v1161_v59  ;;  %v3419_v59 = vsub.f32 %v1682_v47, %v3405_v44 }
 0x17c   : > { %v2453_v6 = vpop.eup %2452  ;;  %v1065_v21 = vadd.f32 %v1064_v48, %v1000_v63  ;;  %v824_v37 = vpop.f32.mrf.mxu2  ;;  %v1794_v52 = vand.u32 4294901760, %v3402_v32  ;;  %v1681_v63 = vld [vmem:[#allocation4 + $0x60] sm:$0xff] }
 0x17d   : > { %v825_v57 = vadd.f32 %v824_v37, %v737_v1  ;;  %v1163_v38 = vand.u32 4294901760, %v1162_v5  ;;  %v3367_v54 = vand.u32 4294901760, %v2453_v6  ;;  %v910_v28 = vpop.f32.mrf.mxu3  ;;  %v3421_v5 = vand.u32 4294901760, %v1681_v63 }
 0x17e   : > { %2454 = vtanh.f32 %v1065_v21  ;;  %v1795_v12 = vsub.f32 %v3402_v32, %v1794_v52  ;;  %v1680_v21 = vld [vmem:[#allocation4 + $0x58] sm:$0xff] }
 0x17f   : > { %1164 = vmatmul.f32.gmra.mxu2 %v1163_v38  ;;  %1313 = vmatmul.f32.gmra.mxu3 %v3367_v54  ;;  %v905_v61 = vadd.f32 %v904_v35, %v825_v57  ;;  %v1168_v20 = vsub.f32 %v2453_v6, %v3367_v54  ;;  %v1800_v6 = vand.u32 4294901760, %v3419_v59  ;;  %v3427_v35 = vsub.f32 %v1681_v63, %v3421_v5 }
 0x180   : > { %v1796_v1 = vand.u32 4294901760, %v1795_v12  ;;  %v3432_v57 = vand.u32 4294901760, %v1680_v21  ;;  %v3525_v63 = vand.u32 4294901760, %v1673_v25 }
 0x181   : > { %v1003_v13 = vpop.f32.mrf.mxu0  ;;  %1399 = vmatmul.f32.gmra.mxu0 %v1168_v20  ;;  %v1169_v26 = vand.u32 4294901760, %v1168_v20  ;;  %v1072_v9 = vpop.f32.mrf.mxu1  ;;  %v1801_v37 = vsub.f32 %v3419_v59, %v1800_v6  ;;  %v1806_v56 = vand.u32 4294901760, %v3427_v35 }
 0x182   : > { %v1004_v30 = vadd.f32 %v1003_v13, %v905_v61  ;;  %v1679_v13 = vld [vmem:[#allocation4 + $0x50] sm:$0xff] }
 0x183   : > { %1477 = vmatmul.f32.gmra.mxu1 %v1169_v26  ;;  %v1170_v46 = vsub.f32 %v1168_v20, %v1169_v26  ;;  %v1802_v61 = vand.u32 4294901760, %v1801_v37  ;;  %v1807_v20 = vsub.f32 %v3427_v35, %v1806_v56 }
 0x184   : > { %v2455_v7 = vpop.eup %2454  ;;  %v1069_v17 = vadd.f32 %v1068_v58, %v1004_v30  ;;  %v829_v42 = vpop.f32.mrf.mxu2  ;;  %v3447_v58 = vsub.f32 %v1680_v21, %v3432_v57  ;;  %v3449_v30 = vand.u32 4294901760, %v1679_v13 }
 0x185   : > { %v830_v36 = vadd.f32 %v829_v42, %v741_v33  ;;  %v1171_v29 = vand.u32 4294901760, %v1170_v46  ;;  %v1175_v34 = vand.u32 4294901760, %v2455_v7  ;;  %v1808_v26 = vand.u32 4294901760, %v1807_v20 }
 0x186   : > { %2456 = vtanh.f32 %v1069_v17  ;;  %v1812_v33 = vand.u32 4294901760, %v3447_v58  ;;  %v3455_v46 = vsub.f32 %v1679_v13, %v3449_v30  ;;  %v3537_v13 = vsub.f32 %v1673_v25, %v3525_v63 }
 0x187   : > { %1172 = vmatmul.f32.gmra.mxu2 %v1171_v29  ;;  %1317 = vmatmul.f32.gmra.mxu3 %v1175_v34  ;;  %v911_v53 = vadd.f32 %v910_v28, %v830_v36  ;;  %v1176_v0 = vsub.f32 %v2455_v7, %v1175_v34  ;;  %v1678_v7 = vld [vmem:[#allocation4 + $0x48] sm:$0xff] }
 0x188   : > { %v1813_v17 = vsub.f32 %v3447_v58, %v1812_v33  ;;  %v3460_v42 = vand.u32 4294901760, %v1678_v7 }
 0x189   : > { %v1007_v23 = vpop.f32.mrf.mxu0  ;;  %1404 = vmatmul.f32.gmra.mxu0 %v1176_v0  ;;  %v1177_v3 = vand.u32 4294901760, %v1176_v0 }
 0x18a   : > { %v1008_v2 = vadd.f32 %v1007_v23, %v911_v53  ;;  %v1814_v28 = vand.u32 4294901760, %v1813_v17  ;;  %v1677_v23 = vld [vmem:[#allocation4 + $0x40] sm:$0xff] }
 0x18b   : > { %1483 = vmatmul.f32.gmra.mxu1 %v1177_v3  ;;  %v1178_v14 = vsub.f32 %v1176_v0, %v1177_v3  ;;  %v3475_v0 = vsub.f32 %v1678_v7, %v3460_v42  ;;  %v1676_v3 = vld [vmem:[#allocation4 + $0x38] sm:$0xff] }
 0x18c   : > { %v2457_v16 = vpop.eup %2456  ;;  %v1073_v39 = vadd.f32 %v1072_v9, %v1008_v2  ;;  %v3477_v9 = vand.u32 4294901760, %v1677_v23 }
 0x18d   : > { %v1179_v22 = vand.u32 4294901760, %v1178_v14  ;;  %v1183_v24 = vand.u32 4294901760, %v2457_v16  ;;  %v3479_v14 = vand.u32 4294901760, %v1676_v3 }
 0x18e   : > { %2458 = vtanh.f32 %v1073_v39  ;;  %v3485_v39 = vsub.f32 %v1677_v23, %v3477_v9 }
 0x18f   : > { %1180 = vmatmul.f32.gmra.mxu2 %v1179_v22  ;;  %1321 = vmatmul.f32.gmra.mxu3 %v1183_v24  ;;  %v1184_v49 = vsub.f32 %v2457_v16, %v1183_v24  ;;  %v1824_v16 = vand.u32 4294901760, %v3475_v0 }
 0x191   : > { %1409 = vmatmul.f32.gmra.mxu0 %v1184_v49  ;;  %v1185_v8 = vand.u32 4294901760, %v1184_v49  ;;  %v1825_v22 = vsub.f32 %v3475_v0, %v1824_v16 }
 0x193   : > { %1489 = vmatmul.f32.gmra.mxu1 %v1185_v8  ;;  %v1186_v40 = vsub.f32 %v1184_v49, %v1185_v8 }
 0x194   : > { %v2459_v60 = vpop.eup %2458 }
 0x195   : > { %v1187_v50 = vand.u32 4294901760, %v1186_v40  ;;  %v1191_v62 = vand.u32 4294901760, %v2459_v60  ;;  %v1830_v40 = vand.u32 4294901760, %v3485_v39 }
 0x197   : > { %1188 = vmatmul.f32.gmra.mxu2 %v1187_v50  ;;  %1325 = vmatmul.f32.gmra.mxu3 %v1191_v62  ;;  %v1192_v41 = vsub.f32 %v2459_v60, %v1191_v62  ;;  %v3498_v60 = vsub.f32 %v1676_v3, %v3479_v14 }
 0x199   : > { %1414 = vmatmul.f32.gmra.mxu0 %v1192_v41  ;;  %v1193_v4 = vand.u32 4294901760, %v1192_v41 }
 0x19b   : > { %1495 = vmatmul.f32.gmra.mxu1 %v1193_v4  ;;  %v1194_v15 = vsub.f32 %v1192_v41, %v1193_v4  ;;  %v1674_v41 = vld [vmem:[#allocation4 + $0x28] sm:$0xff]  ;;  %v1831_v4 = vsub.f32 %v3485_v39, %v1830_v40 }
 0x19d   : > { %v1195_v19 = vand.u32 4294901760, %v1194_v15  ;;  %v1836_v15 = vand.u32 4294901760, %v3498_v60 }
 0x19f   : > { %1196 = vmatmul.f32.gmra.mxu2 %v1195_v19  ;;  %1629 = vmatmul.f32.vlgmr.msrb.gmra.mxu3 %v3338_v18  ;;  %v1837_v47 = vsub.f32 %v3498_v60, %v1836_v15 }
 0x1a1   : > { %v1838_v21 = vand.u32 4294901760, %v1837_v47 }
 0x1a7   : > { %1564 = vmatmul.f32.vlgmr.msrb.gmra.mxu2 %v3338_v18  ;;  %1633 = vmatmul.f32.gmra.mxu3 %v3346_v45  ;;  %v1684_v18 = vld [vmem:[#allocation4 + $0x78] sm:$0xff] }
 0x1af   : > { %1568 = vmatmul.f32.gmra.mxu2 %v3346_v45  ;;  %1637 = vmatmul.f32.gmra.mxu3 %v3353_v55  ;;  %v3384_v45 = vand.u32 4294901760, %v1684_v18 }
 0x1b1   : > { %1690 = vmatpush.msrb.mxu0 %v3384_v45  ;;  %2005 = vmatpush.msra.mxu3 %v3384_v45 }
 0x1b3   : > { %1692 = vmatpush.msrb.mxu0 %v3395_v27  ;;  %2007 = vmatpush.msra.mxu3 %v3395_v27 }
 0x1b5   : > { %1694 = vmatpush.msrb.mxu0 %v3405_v44  ;;  %2009 = vmatpush.msra.mxu3 %v3405_v44 }
 0x1b7   : > { %1572 = vmatmul.f32.gmra.mxu2 %v3353_v55  ;;  %1641 = vmatmul.f32.gmra.mxu3 %v3360_v43  ;;  %v3390_v55 = vsub.f32 %v1684_v18, %v3384_v45  ;;  %v3512_v18 = vand.u32 4294901760, %v1674_v41 }
 0x1b8   : > { %1696 = vmatpush.msrb.mxu0 %v3421_v5  ;;  %2011 = vmatpush.msra.mxu3 %v3421_v5 }
 0x1b9   : > { %v1788_v11 = vand.u32 4294901760, %v3390_v55  ;;  %1917 = vmatpush.msra.mxu2 %v3390_v55  ;;  %v3522_v12 = vsub.f32 %v1674_v41, %v3512_v18 }
 0x1ba   : > { %1698 = vmatpush.msrb.mxu0 %v3432_v57  ;;  %2013 = vmatpush.msra.mxu3 %v3432_v57 }
 0x1bb   : > { %v1789_v31 = vsub.f32 %v3390_v55, %v1788_v11  ;;  %1920 = vmatpush.msra.mxu2 %v3402_v32 }
 0x1bc   : > { %1700 = vmatpush.msrb.mxu0 %v3449_v30  ;;  %2015 = vmatpush.msra.mxu3 %v3449_v30 }
 0x1bd   : > { %1923 = vmatpush.msra.mxu2 %v3419_v59 }
 0x1be   : > { %1702 = vmatpush.msrb.mxu0 %v3460_v42  ;;  %2017 = vmatpush.msra.mxu3 %v3460_v42 }
 0x1bf   : > { %1576 = vmatmul.f32.gmra.mxu2 %v3360_v43  ;;  %1645 = vmatmul.f32.gmra.mxu3 %v3367_v54  ;;  %v1790_v43 = vand.u32 4294901760, %v1789_v31  ;;  %v1832_v31 = vand.u32 4294901760, %v1831_v4 }
 0x1c0   : > { %1926 = vmatpush.msra.mxu2 %v3427_v35  ;;  %1704 = vmatpush.msrb.mxu0 %v3477_v9 }
 0x1c1   : > { %1791 = vmatpush.msrb.mxu1 %v1790_v43  ;;  %2019 = vmatpush.msra.mxu3 %v3477_v9 }
 0x1c2   : > { %1929 = vmatpush.msra.mxu2 %v3447_v58  ;;  %1706 = vmatpush.msrb.mxu0 %v3479_v14 }
 0x1c3   : > { %1797 = vmatpush.msrb.mxu1 %v1796_v1  ;;  %2021 = vmatpush.msra.mxu3 %v3479_v14  ;;  %v1672_v1 = vld [vmem:[#allocation4 + $0x18] sm:$0xff] }
 0x1c4   : > { %1932 = vmatpush.msra.mxu2 %v3455_v46  ;;  %v3533_v20 = vand.u32 4294901760, %v1672_v1 }
 0x1c5   : > { %1803 = vmatpush.msrb.mxu1 %v1802_v61  ;;  %v1848_v61 = vand.u32 4294901760, %v3522_v12 }
 0x1c6   : > { %1935 = vmatpush.msra.mxu2 %v3475_v0  ;;  %v3548_v23 = vsub.f32 %v1672_v1, %v3533_v20 }
 0x1c7   : > { %1580 = vmatmul.f32.gmra.mxu2 %v3367_v54  ;;  %1649 = vmatmul.f32.gmra.mxu3 %v1175_v34 }
 0x1c8   : > { %1809 = vmatpush.msrb.mxu1 %v1808_v26  ;;  %1938 = vmatpush.msra.mxu2 %v3485_v39  ;;  %v1671_v26 = vld [vmem:[#allocation4 + $0x10] sm:$0xff]  ;;  %v3783_v58 = vand.u32 4294901760, %v3548_v23 }
 0x1c9   : > { %v3550_v3 = vand.u32 4294901760, %v1671_v26 }
 0x1ca   : > { %1815 = vmatpush.msrb.mxu1 %v1814_v28  ;;  %1941 = vmatpush.msra.mxu2 %v3498_v60 }
 0x1cb   : > { %v3557_v41 = vsub.f32 %v1671_v26, %v3550_v3 }
 0x1cd   : > { %v3776_v1 = vand.u32 4294901760, %v3557_v41 }
 0x1cf   : > { %1584 = vmatmul.f32.gmra.mxu2 %v1175_v34  ;;  %1653 = vmatmul.f32.gmra.mxu3 %v1183_v24  ;;  %v1818_v34 = vand.u32 4294901760, %v3455_v46 }
 0x1d1   : > { %v1819_v53 = vsub.f32 %v3455_v46, %v1818_v34 }
 0x1d3   : > { %v1820_v2 = vand.u32 4294901760, %v1819_v53  ;;  %v1849_v53 = vsub.f32 %v3522_v12, %v1848_v61 }
 0x1d5   : > { %1821 = vmatpush.msrb.mxu1 %v1820_v2  ;;  %v3775_v2 = vand.u32 4294901760, %v3537_v13 }
 0x1d7   : > { %1588 = vmatmul.f32.gmra.mxu2 %v1183_v24  ;;  %1657 = vmatmul.f32.gmra.mxu3 %v1191_v62  ;;  %v1675_v24 = vld [vmem:[#allocation4 + $0x30] sm:$0xff]  ;;  %v1855_v25 = vsub.f32 %v3537_v13, %v3775_v2 }
 0x1d8   : > { %v3500_v50 = vand.u32 4294901760, %v1675_v24 }
 0x1d9   : > { %v1856_v26 = vand.u32 4294901760, %v1855_v25 }
 0x1da   : > { %1708 = vmatpush.msrb.mxu0 %v3500_v50  ;;  %v3510_v19 = vsub.f32 %v1675_v24, %v3500_v50  ;;  %2023 = vmatpush.msra.mxu3 %v3500_v50  ;;  %v1850_v24 = vand.u32 4294901760, %v1849_v53  ;;  %v1867_v53 = vsub.f32 %v3557_v41, %v3776_v1 }
 0x1dc   : > { %v1842_v43 = vand.u32 4294901760, %v3510_v19  ;;  %1710 = vmatpush.msrb.mxu0 %v3512_v18  ;;  %1944 = vmatpush.msra.mxu2 %v3510_v19  ;;  %v1868_v2 = vand.u32 4294901760, %v1867_v53 }
 0x1dd   : > { %2025 = vmatpush.msra.mxu3 %v3512_v18 }
 0x1de   : > { %v1843_v37 = vsub.f32 %v3510_v19, %v1842_v43  ;;  %1947 = vmatpush.msra.mxu2 %v3522_v12  ;;  %1712 = vmatpush.msrb.mxu0 %v3525_v63  ;;  %v1380_v53 = vpop.f32.mrf.mxu0 }
 0x1df   : > { %1592 = vmatmul.f32.gmra.mxu2 %v1191_v62  ;;  %v1826_v62 = vand.u32 4294901760, %v1825_v22  ;;  %2027 = vmatpush.msra.mxu3 %v3525_v63  ;;  %v1670_v22 = vld [vmem:[#allocation4 + $0x8] sm:$0xff] }
 0x1e0   : > { %v1844_v28 = vand.u32 4294901760, %v1843_v37  ;;  %1714 = vmatpush.msrb.mxu0 %v3533_v20  ;;  %1950 = vmatpush.msra.mxu2 %v3537_v13  ;;  %v3559_v4 = vand.u32 4294901760, %v1670_v22 }
 0x1e1   : > { %1827 = vmatpush.msrb.mxu1 %v1826_v62  ;;  %v3774_v62 = vand.u32 4294901760, %v3548_v23  ;;  %2029 = vmatpush.msra.mxu3 %v3533_v20 }
 0x1e2   : > { %v3386_v10 = vpop.f32.mrf.mxu3  ;;  %1953 = vmatpush.msra.mxu2 %v3548_v23  ;;  %1716 = vmatpush.msrb.mxu0 %v3550_v3 }
 0x1e3   : > { %1833 = vmatpush.msrb.mxu1 %v1832_v31  ;;  %v1669_v31 = vld [vmem:[#allocation4] sm:$0xff]  ;;  %v1861_v47 = vsub.f32 %v3548_v23, %v3774_v62  ;;  %2031 = vmatpush.msra.mxu3 %v3550_v3 }
 0x1e4   : > { %v3574_v37 = vand.u32 4294901760, %v1669_v31  ;;  %1956 = vmatpush.msra.mxu2 %v3557_v41  ;;  %1718 = vmatpush.msrb.mxu0 %v3559_v4 }
 0x1e5   : > { %1839 = vmatpush.msrb.mxu1 %v1838_v21  ;;  %v3572_v21 = vsub.f32 %v1670_v22, %v3559_v4  ;;  %2033 = vmatpush.msra.mxu3 %v3559_v4 }
 0x1e6   : > { %v3584_v62 = vsub.f32 %v1669_v31, %v3574_v37  ;;  %1720 = vmatpush.msrb.mxu0 %v3574_v37  ;;  %v1385_v32 = vpop.f32.mrf.mxu0 }
 0x1e7   : > { %1845 = vmatpush.msrb.mxu1 %v1844_v28  ;;  %v1862_v28 = vand.u32 4294901760, %v1861_v47  ;;  %1959 = vmatpush.msra.mxu2 %v3572_v21 }
 0x1e8   : > { %v3778_v1 = vand.u32 4294901760, %v3584_v62  ;;  %2035 = vmatpush.msra.mxu3 %v3574_v37  ;;  %2088 = vmatpush.msra.mxu0 %v1788_v11 }
 0x1e9   : > { %1851 = vmatpush.msrb.mxu1 %v1850_v24  ;;  %v3777_v24 = vand.u32 4294901760, %v3572_v21  ;;  %1962 = vmatpush.msra.mxu2 %v3584_v62 }
 0x1ea   : > { %v3407_v48 = vpop.f32.mrf.mxu2  ;;  %v3409_v51 = vpop.f32.mrf.mxu3  ;;  %2092 = vmatpush.msra.mxu0 %v1794_v52 }
 0x1eb   : > { %1857 = vmatpush.msrb.mxu1 %v1856_v26  ;;  %v1873_v47 = vsub.f32 %v3572_v21, %v3777_v24  ;;  %v1879_v26 = vsub.f32 %v3584_v62, %v3778_v1 }
 0x1ec   : > { %2096 = vmatpush.msra.mxu0 %v1800_v6 }
 0x1ed   : > { %1863 = vmatpush.msrb.mxu1 %v1862_v28  ;;  %v1874_v31 = vand.u32 4294901760, %v1873_v47  ;;  %v1880_v24 = vand.u32 4294901760, %v1879_v26  ;;  %v1454_v28 = vpop.f32.mrf.mxu1  ;;  %v3611_v47 = vld [vmem:[%s3769_s6] ss:$0 sm:$0xff] }
 0x1ee   : > { %2100 = vmatpush.msra.mxu0 %v1806_v56  ;;  %v1142_v11 = vadd.f32 %v3611_v47, %v3407_v48 }
 0x1ef   : > { %1869 = vmatpush.msrb.mxu1 %v1868_v2 }
 0x1f0   : > { %2104 = vmatpush.msra.mxu0 %v1812_v33 }
 0x1f1   : > { %1875 = vmatpush.msrb.mxu1 %v1874_v31 }
 0x1f2   : > { %v3435_v38 = vpop.f32.mrf.mxu2  ;;  %v3437_v54 = vpop.f32.mrf.mxu3  ;;  %2108 = vmatpush.msra.mxu0 %v1818_v34  ;;  %v3785_v34 = vand.u32 4294901760, %v3572_v21 }
 0x1f3   : > { %1881 = vmatpush.msrb.mxu1 %v1880_v24  ;;  %v1150_v48 = vadd.f32 %v3611_v47, %v3435_v38  ;;  %v3782_v38 = vand.u32 4294901760, %v3537_v13 }
 0x1f4   : > { %2112 = vmatpush.msra.mxu0 %v1824_v16 }
 0x1f5   : > { %2183 = vmatpush.msra.mxu1 %v3384_v45  ;;  %v1299_v45 = vadd.f32 %v3386_v10, %v1142_v11  ;;  %v1390_v10 = vpop.f32.mrf.mxu0 }
 0x1f6   : > { %2116 = vmatpush.msra.mxu0 %v1830_v40 }
 0x1f7   : > { %2185 = vmatpush.msra.mxu1 %v3395_v27  ;;  %v1381_v59 = vadd.f32 %v1380_v53, %v1299_v45 }
 0x1f8   : > { %2120 = vmatpush.msra.mxu0 %v1836_v15 }
 0x1f9   : > { %2187 = vmatpush.msra.mxu1 %v3405_v44  ;;  %v1460_v44 = vpop.f32.mrf.mxu1  ;;  %v1455_v6 = vadd.f32 %v1454_v28, %v1381_v59 }
 0x1fa   : > { %v3463_v36 = vpop.f32.mrf.mxu2  ;;  %v3465_v29 = vpop.f32.mrf.mxu3  ;;  %2124 = vmatpush.msra.mxu0 %v1842_v43 }
 0x1fb   : > { %2189 = vmatpush.msra.mxu1 %v3421_v5  ;;  %v1303_v5 = vadd.f32 %v3409_v51, %v1150_v48 }
 0x1fc   : > { %2128 = vmatpush.msra.mxu0 %v1848_v61 }
 0x1fd   : > { %2191 = vmatpush.msra.mxu1 %v3432_v57  ;;  %v1386_v46 = vadd.f32 %v1385_v32, %v1303_v5  ;;  %v1395_v40 = vpop.f32.mrf.mxu0 }
 0x1fe   : > { %2132 = vmatpush.msra.mxu0 %v3782_v38 }
 0x1ff   : > { %2193 = vmatpush.msra.mxu1 %v3449_v30  ;;  %v1158_v30 = vadd.f32 %v3611_v47, %v3463_v36  ;;  %v3786_v36 = vand.u32 4294901760, %v3584_v62 }
 0x200   : > { %2136 = vmatpush.msra.mxu0 %v3783_v58 }
 0x201   : > { %2195 = vmatpush.msra.mxu1 %v3460_v42  ;;  %v1466_v51 = vpop.f32.mrf.mxu1  ;;  %v3784_v42 = vand.u32 4294901760, %v3557_v41  ;;  %v1307_v0 = vadd.f32 %v3437_v54, %v1158_v30 }
 0x202   : > { %v3491_v49 = vpop.f32.mrf.mxu2  ;;  %v3493_v8 = vpop.f32.mrf.mxu3 }
 0x203   : > { %2197 = vmatpush.msra.mxu1 %v3477_v9  ;;  %2140 = vmatpush.msra.mxu0 %v3784_v42  ;;  %v1461_v9 = vadd.f32 %v1460_v44, %v1386_v46  ;;  %v1391_v19 = vadd.f32 %v1390_v10, %v1307_v0 }
 0x205   : > { %2199 = vmatpush.msra.mxu1 %v3479_v14  ;;  %2144 = vmatpush.msra.mxu0 %v3785_v34 }
 0x207   : > { %2201 = vmatpush.msra.mxu1 %v3500_v50  ;;  %2148 = vmatpush.msra.mxu0 %v3786_v36  ;;  %v1166_v50 = vadd.f32 %v3611_v47, %v3491_v49 }
 0x209   : > { %2203 = vmatpush.msra.mxu1 %v3512_v18  ;;  %v1472_v54 = vpop.f32.mrf.mxu1  ;;  %v1311_v12 = vadd.f32 %v3465_v29, %v1166_v50 }
 0x20a   : > { %v3540_v7 = vpop.f32.mrf.mxu2  ;;  %v3542_v17 = vpop.f32.mrf.mxu3 }
 0x20b   : > { %2205 = vmatpush.msra.mxu1 %v3525_v63  ;;  %v1467_v63 = vadd.f32 %v1466_v51, %v1391_v19  ;;  %v1174_v2 = vadd.f32 %v3611_v47, %v3540_v7  ;;  %v1396_v41 = vadd.f32 %v1395_v40, %v1311_v12 }
 0x20d   : > { %2207 = vmatpush.msra.mxu1 %v3533_v20  ;;  %v1473_v31 = vadd.f32 %v1472_v54, %v1396_v41 }
 0x20f   : > { %2209 = vmatpush.msra.mxu1 %v3550_v3 }
 0x211   : > { %2211 = vmatpush.msra.mxu1 %v3559_v4  ;;  %v1400_v4 = vpop.f32.mrf.mxu0  ;;  %v1478_v26 = vpop.f32.mrf.mxu1 }
 0x212   : > { %v3588_v22 = vpop.f32.mrf.mxu2  ;;  %v3590_v25 = vpop.f32.mrf.mxu3 }
 0x213   : > { %2213 = vmatpush.msra.mxu1 %v3574_v37  ;;  %v1315_v37 = vadd.f32 %v3493_v8, %v1174_v2  ;;  %v1182_v45 = vadd.f32 %v3611_v47, %v3588_v22 }
 0x215   : > { %v1401_v44 = vadd.f32 %v1400_v4, %v1315_v37 }
 0x219   : > { %v1405_v8 = vpop.f32.mrf.mxu0 }
 0x21a   : > { %v3613_v1 = vpop.f32.mrf.mxu2  ;;  %v3615_v55 = vpop.f32.mrf.mxu3 }
 0x222   : > { %v3632_v27 = vpop.f32.mrf.mxu2  ;;  %v1630_v52 = vpop.f32.mrf.mxu3 }
 0x223   : > { %v1198_v50 = vadd.f32 %v3611_v47, %v3632_v27 }
 0x22a   : > { %v1565_v35 = vpop.f32.mrf.mxu2  ;;  %v1634_v57 = vpop.f32.mrf.mxu3 }
 0x22b   : > { %v1566_v56 = vadd.f32 %v1565_v35, %v1455_v6  ;;  %v1319_v6 = vadd.f32 %v3542_v17, %v1182_v45  ;;  %v1479_v35 = vadd.f32 %v1478_v26, %v1401_v44 }
 0x22d   : > { %v1631_v33 = vadd.f32 %v1630_v52, %v1566_v56  ;;  %v1484_v56 = vpop.f32.mrf.mxu1  ;;  %v1406_v51 = vadd.f32 %v1405_v8, %v1319_v6 }
 0x22f   : > { %2460 = vtanh.f32 %v1631_v33  ;;  %v1190_v33 = vadd.f32 %v3611_v47, %v3613_v1 }
 0x232   : > { %v1569_v14 = vpop.f32.mrf.mxu2  ;;  %v1638_v16 = vpop.f32.mrf.mxu3 }
 0x233   : > { %v1570_v39 = vadd.f32 %v1569_v14, %v1461_v9  ;;  %v1323_v9 = vadd.f32 %v3590_v25, %v1190_v33  ;;  %v1485_v14 = vadd.f32 %v1484_v56, %v1406_v51 }
 0x235   : > { %v2461_v60 = vpop.eup %2460  ;;  %v1635_v15 = vadd.f32 %v1634_v57, %v1570_v39  ;;  %v1490_v54 = vpop.f32.mrf.mxu1 }
 0x236   : > { %v3670_v18 = vand.u32 4294901760, %v2461_v60 }
 0x237   : > { %2462 = vtanh.f32 %v1635_v15 }
 0x238   : > { %1883 = vmatmul.f32.vlgmr.msrb.gmra.mxu1 %v3670_v18  ;;  %v1722_v43 = vsub.f32 %v2461_v60, %v3670_v18 }
 0x23a   : > { %v1573_v61 = vpop.f32.mrf.mxu2  ;;  %1965 = vmatmul.f32.vlgmr.msra.gmra.mxu2 %v1722_v43  ;;  %v1723_v49 = vand.u32 4294901760, %v1722_v43  ;;  %v1642_v13 = vpop.f32.mrf.mxu3 }
 0x23b   : > { %v1574_v20 = vadd.f32 %v1573_v61, %v1467_v63  ;;  %v1327_v63 = vadd.f32 %v3615_v55, %v1198_v50 }
 0x23c   : > { %2039 = vmatmul.f32.vlgmr.msra.gmra.mxu3 %v1723_v49  ;;  %v1724_v23 = vsub.f32 %v1722_v43, %v1723_v49 }
 0x23d   : > { %v2463_v3 = vpop.eup %2462  ;;  %v1639_v62 = vadd.f32 %v1638_v16, %v1574_v20  ;;  %v1410_v16 = vpop.f32.mrf.mxu0 }
 0x23e   : > { %v1725_v21 = vand.u32 4294901760, %v1724_v23  ;;  %v3679_v24 = vand.u32 4294901760, %v2463_v3  ;;  %v1411_v19 = vadd.f32 %v1410_v16, %v1323_v9  ;;  %v3720_v9 = vld [vmem:[%s3771_s8] ss:$0 sm:$0xff] }
 0x23f   : > { %2464 = vtanh.f32 %v1639_v62 }
 0x240   : > { %1726 = vmatmul.f32.vlgmr.msrb.gmra.mxu0 %v1725_v21  ;;  %1887 = vmatmul.f32.gmra.mxu1 %v3679_v24  ;;  %v1730_v29 = vsub.f32 %v2463_v3, %v3679_v24  ;;  %v1491_v61 = vadd.f32 %v1490_v54, %v1411_v19  ;;  %v1496_v21 = vpop.f32.mrf.mxu1 }
 0x242   : > { %v1577_v53 = vpop.f32.mrf.mxu2  ;;  %1970 = vmatmul.f32.gmra.mxu2 %v1730_v29  ;;  %v1731_v28 = vand.u32 4294901760, %v1730_v29  ;;  %v1646_v48 = vpop.f32.mrf.mxu3 }
 0x243   : > { %v1578_v7 = vadd.f32 %v1577_v53, %v1473_v31 }
 0x244   : > { %2045 = vmatmul.f32.gmra.mxu3 %v1731_v28  ;;  %v1732_v11 = vsub.f32 %v1730_v29, %v1731_v28 }
 0x245   : > { %v2465_v32 = vpop.eup %2464  ;;  %v1643_v52 = vadd.f32 %v1642_v13, %v1578_v7  ;;  %v1415_v27 = vpop.f32.mrf.mxu0 }
 0x246   : > { %v1733_v59 = vand.u32 4294901760, %v1732_v11  ;;  %v3686_v10 = vand.u32 4294901760, %v2465_v32  ;;  %v1416_v62 = vadd.f32 %v1415_v27, %v1327_v63 }
 0x247   : > { %2466 = vtanh.f32 %v1643_v52 }
 0x248   : > { %1734 = vmatmul.f32.gmra.mxu0 %v1733_v59  ;;  %1891 = vmatmul.f32.gmra.mxu1 %v3686_v10  ;;  %v1738_v5 = vsub.f32 %v2465_v32, %v3686_v10  ;;  %v1497_v55 = vadd.f32 %v1496_v21, %v1416_v62 }
 0x24a   : > { %v1581_v57 = vpop.f32.mrf.mxu2  ;;  %1975 = vmatmul.f32.gmra.mxu2 %v1738_v5  ;;  %v1739_v38 = vand.u32 4294901760, %v1738_v5  ;;  %v1650_v0 = vpop.f32.mrf.mxu3 }
 0x24b   : > { %v1582_v22 = vadd.f32 %v1581_v57, %v1479_v35 }
 0x24c   : > { %2051 = vmatmul.f32.gmra.mxu3 %v1739_v38  ;;  %v1740_v58 = vsub.f32 %v1738_v5, %v1739_v38 }
 0x24d   : > { %v2467_v30 = vpop.eup %2466  ;;  %v1647_v46 = vadd.f32 %v1646_v48, %v1582_v22 }
 0x24e   : > { %v1741_v42 = vand.u32 4294901760, %v1740_v58  ;;  %v3693_v34 = vand.u32 4294901760, %v2467_v30 }
 0x24f   : > { %2468 = vtanh.f32 %v1647_v46 }
 0x250   : > { %1742 = vmatmul.f32.gmra.mxu0 %v1741_v42  ;;  %1895 = vmatmul.f32.gmra.mxu1 %v3693_v34  ;;  %v1746_v17 = vsub.f32 %v2467_v30, %v3693_v34 }
 0x252   : > { %v1585_v36 = vpop.f32.mrf.mxu2  ;;  %1980 = vmatmul.f32.gmra.mxu2 %v1746_v17  ;;  %v1747_v39 = vand.u32 4294901760, %v1746_v17  ;;  %v1654_v49 = vpop.f32.mrf.mxu3 }
 0x253   : > { %v1586_v1 = vadd.f32 %v1585_v36, %v1485_v14 }
 0x254   : > { %2057 = vmatmul.f32.gmra.mxu3 %v1747_v39  ;;  %v1748_v40 = vsub.f32 %v1746_v17, %v1747_v39 }
 0x255   : > { %v2469_v60 = vpop.eup %2468  ;;  %v1651_v15 = vadd.f32 %v1650_v0, %v1586_v1 }
 0x256   : > { %v1749_v43 = vand.u32 4294901760, %v1748_v40  ;;  %v3700_v12 = vand.u32 4294901760, %v2469_v60 }
 0x257   : > { %2470 = vtanh.f32 %v1651_v15 }
 0x258   : > { %1750 = vmatmul.f32.gmra.mxu0 %v1749_v43  ;;  %1899 = vmatmul.f32.gmra.mxu1 %v3700_v12  ;;  %v1754_v25 = vsub.f32 %v2469_v60, %v3700_v12 }
 0x25a   : > { %v1589_v20 = vpop.f32.mrf.mxu2  ;;  %1985 = vmatmul.f32.gmra.mxu2 %v1754_v25  ;;  %v1755_v13 = vand.u32 4294901760, %v1754_v25  ;;  %v1658_v53 = vpop.f32.mrf.mxu3 }
 0x25b   : > { %v1590_v47 = vadd.f32 %v1589_v20, %v1491_v61 }
 0x25c   : > { %2063 = vmatmul.f32.gmra.mxu3 %v1755_v13  ;;  %v1756_v23 = vsub.f32 %v1754_v25, %v1755_v13 }
 0x25d   : > { %v2471_v3 = vpop.eup %2470  ;;  %v1655_v2 = vadd.f32 %v1654_v49, %v1590_v47 }
 0x25e   : > { %v1757_v41 = vand.u32 4294901760, %v1756_v23  ;;  %v1761_v4 = vand.u32 4294901760, %v2471_v3 }
 0x25f   : > { %2472 = vtanh.f32 %v1655_v2 }
 0x260   : > { %1758 = vmatmul.f32.gmra.mxu0 %v1757_v41  ;;  %1903 = vmatmul.f32.gmra.mxu1 %v1761_v4  ;;  %v1762_v29 = vsub.f32 %v2471_v3, %v1761_v4 }
 0x262   : > { %v1593_v37 = vpop.f32.mrf.mxu2  ;;  %1990 = vmatmul.f32.gmra.mxu2 %v1762_v29  ;;  %v1763_v31 = vand.u32 4294901760, %v1762_v29 }
 0x263   : > { %v1594_v26 = vadd.f32 %v1593_v37, %v1497_v55 }
 0x264   : > { %2069 = vmatmul.f32.gmra.mxu3 %v1763_v31  ;;  %v1764_v28 = vsub.f32 %v1762_v29, %v1763_v31 }
 0x265   : > { %v2473_v7 = vpop.eup %2472  ;;  %v1659_v11 = vadd.f32 %v1658_v53, %v1594_v26 }
 0x266   : > { %v1765_v32 = vand.u32 4294901760, %v1764_v28  ;;  %v1769_v45 = vand.u32 4294901760, %v2473_v7 }
 0x267   : > { %2474 = vtanh.f32 %v1659_v11 }
 0x268   : > { %1766 = vmatmul.f32.gmra.mxu0 %v1765_v32  ;;  %1907 = vmatmul.f32.gmra.mxu1 %v1769_v45  ;;  %v1770_v52 = vsub.f32 %v2473_v7, %v1769_v45 }
 0x26a   : > { %1995 = vmatmul.f32.gmra.mxu2 %v1770_v52  ;;  %v1771_v44 = vand.u32 4294901760, %v1770_v52 }
 0x26c   : > { %2075 = vmatmul.f32.gmra.mxu3 %v1771_v44  ;;  %v1772_v48 = vsub.f32 %v1770_v52, %v1771_v44 }
 0x26d   : > { %v2475_v59 = vpop.eup %2474 }
 0x26e   : > { %v1773_v8 = vand.u32 4294901760, %v1772_v48  ;;  %v1777_v5 = vand.u32 4294901760, %v2475_v59 }
 0x270   : > { %1774 = vmatmul.f32.gmra.mxu0 %v1773_v8  ;;  %1911 = vmatmul.f32.gmra.mxu1 %v1777_v5  ;;  %v1778_v6 = vsub.f32 %v2475_v59, %v1777_v5 }
 0x272   : > { %2000 = vmatmul.f32.gmra.mxu2 %v1778_v6  ;;  %v1779_v35 = vand.u32 4294901760, %v1778_v6 }
 0x274   : > { %2081 = vmatmul.f32.gmra.mxu3 %v1779_v35  ;;  %v1780_v57 = vsub.f32 %v1778_v6, %v1779_v35 }
 0x276   : > { %v1781_v38 = vand.u32 4294901760, %v1780_v57 }
 0x278   : > { %1782 = vmatmul.f32.gmra.mxu0 %v1781_v38  ;;  %2215 = vmatmul.f32.vlgmr.msra.gmra.mxu1 %v3670_v18 }
 0x280   : > { %2150 = vmatmul.f32.vlgmr.msra.gmra.mxu0 %v3670_v18  ;;  %2219 = vmatmul.f32.gmra.mxu1 %v3679_v24 }
 0x288   : > { %2154 = vmatmul.f32.gmra.mxu0 %v3679_v24  ;;  %2223 = vmatmul.f32.gmra.mxu1 %v3686_v10 }
 0x290   : > { %2158 = vmatmul.f32.gmra.mxu0 %v3686_v10  ;;  %2227 = vmatmul.f32.gmra.mxu1 %v3693_v34 }
 0x298   : > { %2162 = vmatmul.f32.gmra.mxu0 %v3693_v34  ;;  %2231 = vmatmul.f32.gmra.mxu1 %v3700_v12 }
 0x2a0   : > { %2166 = vmatmul.f32.gmra.mxu0 %v3700_v12  ;;  %2235 = vmatmul.f32.gmra.mxu1 %v1761_v4 }
 0x2a8   : > { %2170 = vmatmul.f32.gmra.mxu0 %v1761_v4  ;;  %2239 = vmatmul.f32.gmra.mxu1 %v1769_v45 }
 0x2b0   : > { %2174 = vmatmul.f32.gmra.mxu0 %v1769_v45  ;;  %2243 = vmatmul.f32.gmra.mxu1 %v1777_v5 }
 0x2b5   : > { %v1884_v18 = vpop.f32.mrf.mxu1 }
 0x2b8   : > { %2178 = vmatmul.f32.gmra.mxu0 %v1777_v5 }
 0x2bd   : > { %v1727_v24 = vpop.f32.mrf.mxu0  ;;  %v1888_v22 = vpop.f32.mrf.mxu1 }
 0x2be   : > { %v1966_v17 = vpop.f32.mrf.mxu2  ;;  %v1728_v39 = vadd.f32 %v3720_v9, %v1727_v24 }
 0x2bf   : > { %v2040_v14 = vpop.f32.mrf.mxu3 }
 0x2c0   : > { %v1885_v40 = vadd.f32 %v1884_v18, %v1728_v39 }
 0x2c2   : > { %v1967_v19 = vadd.f32 %v1966_v17, %v1885_v40 }
 0x2c4   : > { %v2041_v43 = vadd.f32 %v2040_v14, %v1967_v19 }
 0x2c5   : > { %v1735_v56 = vpop.f32.mrf.mxu0  ;;  %v1892_v58 = vpop.f32.mrf.mxu1 }
 0x2c6   : > { %v1971_v1 = vpop.f32.mrf.mxu2  ;;  %v1736_v54 = vadd.f32 %v3720_v9, %v1735_v56 }
 0x2c7   : > { %v2046_v15 = vpop.f32.mrf.mxu3 }
 0x2c8   : > { %v1889_v12 = vadd.f32 %v1888_v22, %v1736_v54 }
 0x2ca   : > { %v1972_v20 = vadd.f32 %v1971_v1, %v1889_v12 }
 0x2cc   : > { %v2047_v23 = vadd.f32 %v2046_v15, %v1972_v20 }
 0x2cd   : > { %v1743_v10 = vpop.f32.mrf.mxu0  ;;  %v1896_v30 = vpop.f32.mrf.mxu1 }
 0x2ce   : > { %v1976_v25 = vpop.f32.mrf.mxu2  ;;  %v1744_v13 = vadd.f32 %v3720_v9, %v1743_v10 }
 0x2cf   : > { %v2052_v27 = vpop.f32.mrf.mxu3 }
 0x2d0   : > { %v1893_v3 = vadd.f32 %v1892_v58, %v1744_v13 }
 0x2d2   : > { %v1977_v21 = vadd.f32 %v1976_v25, %v1893_v3 }
 0x2d4   : > { %v2053_v31 = vadd.f32 %v2052_v27, %v1977_v21 }
 0x2d5   : > { %v1751_v33 = vpop.f32.mrf.mxu0  ;;  %v1900_v46 = vpop.f32.mrf.mxu1 }
 0x2d6   : > { %v1981_v4 = vpop.f32.mrf.mxu2  ;;  %v1752_v29 = vadd.f32 %v3720_v9, %v1751_v33 }
 0x2d7   : > { %v2058_v37 = vpop.f32.mrf.mxu3 }
 0x2d8   : > { %v1897_v26 = vadd.f32 %v1896_v30, %v1752_v29 }
 0x2da   : > { %v1982_v11 = vadd.f32 %v1981_v4, %v1897_v26 }
 0x2dc   : > { %v2059_v44 = vadd.f32 %v2058_v37, %v1982_v11 }
 0x2dd   : > { %v1759_v51 = vpop.f32.mrf.mxu0  ;;  %v1904_v42 = vpop.f32.mrf.mxu1 }
 0x2de   : > { %v1760_v32 = vadd.f32 %v3720_v9, %v1759_v51  ;;  %v1986_v52 = vpop.f32.mrf.mxu2 }
 0x2df   : > { %v2064_v59 = vpop.f32.mrf.mxu3 }
 0x2e0   : > { %v1901_v48 = vadd.f32 %v1900_v46, %v1760_v32 }
 0x2e2   : > { %v1987_v6 = vadd.f32 %v1986_v52, %v1901_v48 }
 0x2e4   : > { %v2065_v24 = vadd.f32 %v2064_v59, %v1987_v6 }
 0x2e5   : > { %v1767_v34 = vpop.f32.mrf.mxu0  ;;  %v3715_v0 = vpop.f32.mrf.mxu1 }
 0x2e6   : > { %v1768_v35 = vadd.f32 %v3720_v9, %v1767_v34  ;;  %v1991_v18 = vpop.f32.mrf.mxu2 }
 0x2e7   : > { %v2070_v10 = vpop.f32.mrf.mxu3 }
 0x2e8   : > { %v1905_v22 = vadd.f32 %v1904_v42, %v1768_v35 }
 0x2ea   : > { %v1992_v30 = vadd.f32 %v1991_v18, %v1905_v22 }
 0x2ec   : > { %v2071_v17 = vadd.f32 %v2070_v10, %v1992_v30 }
 0x2ed   : > { %v1775_v16 = vpop.f32.mrf.mxu0  ;;  %v3722_v36 = vpop.f32.mrf.mxu1 }
 0x2ee   : > { %v1776_v33 = vadd.f32 %v3720_v9, %v1775_v16  ;;  %v1996_v14 = vpop.f32.mrf.mxu2 }
 0x2ef   : > { %v2076_v15 = vpop.f32.mrf.mxu3 }
 0x2f0   : > { %v1909_v34 = vadd.f32 %v3715_v0, %v1776_v33 }
 0x2f2   : > { %v1997_v40 = vadd.f32 %v1996_v14, %v1909_v34 }
 0x2f4   : > { %v2077_v16 = vadd.f32 %v2076_v15, %v1997_v40 }
 0x2f5   : > { %v3725_v60 = vpop.f32.mrf.mxu0  ;;  %v2216_v50 = vpop.f32.mrf.mxu1 }
 0x2f6   : > { %v1784_v42 = vadd.f32 %v3720_v9, %v3725_v60  ;;  %v2001_v0 = vpop.f32.mrf.mxu2 }
 0x2f8   : > { %v1913_v19 = vadd.f32 %v3722_v36, %v1784_v42 }
 0x2fa   : > { %v2002_v25 = vadd.f32 %v2001_v0, %v1913_v19 }
 0x2fd   : > { %v2151_v63 = vpop.f32.mrf.mxu0  ;;  %v2220_v61 = vpop.f32.mrf.mxu1 }
 0x2fe   : > { %v2152_v49 = vadd.f32 %v2151_v63, %v2041_v43 }
 0x300   : > { %v2217_v47 = vadd.f32 %v2216_v50, %v2152_v49 }
 0x302   : > { %2248 = vst.msk [vmem:[%s3733_s18] sm:$0xff] %vm2247_vm0, %v2217_v47 }
 0x305   : > { %v2155_v2 = vpop.f32.mrf.mxu0  ;;  %v2224_v62 = vpop.f32.mrf.mxu1 }
 0x306   : > { %v2156_v41 = vadd.f32 %v2155_v2, %v2047_v23 }
 0x308   : > { %v2221_v55 = vadd.f32 %v2220_v61, %v2156_v41  ;;  %v2082_v61 = vpop.f32.mrf.mxu3 }
 0x309   : > { %v2083_v49 = vadd.f32 %v2082_v61, %v2002_v25 }
 0x30a   : > { %2249 = vst.msk [vmem:[%s3733_s18 + $0x8] sm:$0xff] %vm2247_vm0, %v2221_v55 }
 0x30d   : > { %v2159_v53 = vpop.f32.mrf.mxu0  ;;  %v2228_v7 = vpop.f32.mrf.mxu1 }
 0x30e   : > { %v2160_v28 = vadd.f32 %v2159_v53, %v2053_v31 }
 0x310   : > { %v2225_v45 = vadd.f32 %v2224_v62, %v2160_v28 }
 0x312   : > { %2250 = vst.msk [vmem:[%s3733_s18 + $0x10] sm:$0xff] %vm2247_vm0, %v2225_v45 }
 0x315   : > { %v2163_v8 = vpop.f32.mrf.mxu0  ;;  %v2232_v38 = vpop.f32.mrf.mxu1 }
 0x316   : > { %v2164_v5 = vadd.f32 %v2163_v8, %v2059_v44 }
 0x318   : > { %v2229_v57 = vadd.f32 %v2228_v7, %v2164_v5 }
 0x31a   : > { %2251 = vst.msk [vmem:[%s3733_s18 + $0x18] sm:$0xff] %vm2247_vm0, %v2229_v57 }
 0x31d   : > { %v2167_v56 = vpop.f32.mrf.mxu0  ;;  %v2236_v51 = vpop.f32.mrf.mxu1 }
 0x31e   : > { %v2168_v58 = vadd.f32 %v2167_v56, %v2065_v24 }
 0x320   : > { %v2233_v46 = vadd.f32 %v2232_v38, %v2168_v58 }
 0x322   : > { %2252 = vst.msk [vmem:[%s3733_s18 + $0x20] sm:$0xff] %vm2247_vm0, %v2233_v46 }
 0x325   : > { %v2171_v39 = vpop.f32.mrf.mxu0  ;;  %v2240_v54 = vpop.f32.mrf.mxu1 }
 0x326   : > { %v2172_v1 = vadd.f32 %v2171_v39, %v2071_v17 }
 0x328   : > { %v2237_v50 = vadd.f32 %v2236_v51, %v2172_v1 }
 0x32a   : > { %2253 = vst.msk [vmem:[%s3733_s18 + $0x28] sm:$0xff] %vm2247_vm0, %v2237_v50 }
 0x32d   : > { %v2175_v43 = vpop.f32.mrf.mxu0  ;;  %v2244_v60 = vpop.f32.mrf.mxu1 }
 0x32e   : > { %v2176_v12 = vadd.f32 %v2175_v43, %v2077_v16 }
 0x330   : > { %v2241_v63 = vadd.f32 %v2240_v54, %v2176_v12 }
 0x332   : > { %2254 = vst.msk [vmem:[%s3733_s18 + $0x30] sm:$0xff] %vm2247_vm0, %v2241_v63 }
 0x335   : > { %v2179_v20 = vpop.f32.mrf.mxu0 }
 0x336   : > { %v2180_v9 = vadd.f32 %v2179_v20, %v2083_v49 }
 0x338   : > { %v2245_v13 = vadd.f32 %v2244_v60, %v2180_v9 }
 0x33a   : > { %2255 = vst.msk [vmem:[%s3733_s18 + $0x38] sm:$0xff] %vm2247_vm0, %v2245_v13 }
 0x33b PF: > { %s21_s30 = sadd.s32 1, %s2550_s30  }
 0x33c   : > { %p18_p7 = scmp.ge.s32.totalorder %s21_s30, 4  }
 0x33e   :  { %20 = sbr.rel (!%p18_p7) target bundleno = 2 (0x2), region = 95 }
 0x343   :  { %2278 = vsyncpa [#allocation3], 1 }
 0x344   :  { %2280 = vsyncpa [#allocation3 + $0x1], 1 }
 0x345   :  { %2281 = vsyncpa [#allocation5], 1 }

</bundles_post_ra>
